<compile_context>
chip_gen: v5e
topology: v5e:2x2
jax: 0.10.0
libtpu: 0.0.40
codegen_flags: <defaults>
</compile_context>

<pallas_src>
import jax
import jax.numpy as jnp
from jax import lax
from jax.experimental import pallas as pl
from jax.experimental.pallas import tpu as pltpu


# --------------------------- single fused kernel -----------------------------
def trielan_kernel(gx_ref, ga_ref, sx_ref, sa_ref,
                   gw1_ref, gb1_ref, gw2_ref, gb2_ref,
                   sw1_ref, sb1_ref, sw2_ref, sb2_ref,
                   lng_ref, lnb_ref, wv_ref, bv_ref, wo_ref, bo_ref,
                   w3a_ref, w3b_ref, b3_ref, w4_ref, b4_ref,
                   o_ref):
    eps = 1e-5
    B = ga_ref.shape[0]

    def gcn_embed(x_ref, a_ref, w1_ref, b1_ref, w2_ref, b2_ref):
        # Node-mean pushed through both GCN layers (dropout = identity, eval):
        #   emb = (z @ W1 + s*b1) @ W2 + b2
        #   z_b = (mean(adj_b, 0) @ adj_b) @ x_b           (1, F)
        #   s_b = sum_j mean(adj_b, 0)_j                   scalar
        zs, ss = [], []
        for b in range(B):                                   # B is small & static
            a = a_ref[b]                                     # (N, N)
            m = jnp.mean(a, axis=0, keepdims=True)           # (1, N)
            c = jnp.dot(m, a, preferred_element_type=jnp.float32)          # (1, N)
            zs.append(jnp.dot(c, x_ref[b], preferred_element_type=jnp.float32))  # (1, F)
            ss.append(jnp.sum(m, axis=1, keepdims=True))     # (1, 1)
        z = jnp.concatenate(zs, axis=0)                      # (B, F)
        s = jnp.concatenate(ss, axis=0)                      # (B, 1)
        h = jnp.dot(z, w1_ref[...], preferred_element_type=jnp.float32) \
            + s * b1_ref[...]                                # (B, NH)
        return jnp.dot(h, w2_ref[...], preferred_element_type=jnp.float32) \
            + b2_ref[...]                                    # (B, H)

    g_emb = gcn_embed(gx_ref, ga_ref, gw1_ref, gb1_ref, gw2_ref, gb2_ref)  # (B, H)
    s_emb = gcn_embed(sx_ref, sa_ref, sw1_ref, sb1_ref, sw2_ref, sb2_ref)  # (B, H)

    def layernorm(x):
        mu = jnp.mean(x, axis=-1, keepdims=True)
        var = jnp.mean(jnp.square(x - mu), axis=-1, keepdims=True)
        return (x - mu) * lax.rsqrt(var + eps) * lng_ref[...] + lnb_ref[...]

    def attn_seq1(x):
        # seq_len == 1: softmax over a singleton is exactly 1.0, so the
        # attention output is output_layer(linear_v(x)); q/k/scale cancel.
        v = jnp.dot(x, wv_ref[...], preferred_element_type=jnp.float32) + bv_ref[...]
        return jnp.dot(v, wo_ref[...], preferred_element_type=jnp.float32) + bo_ref[...]

    x1n = layernorm(g_emb)          # (B, H)
    x2n = layernorm(s_emb)          # (B, H)
    y1 = attn_seq1(x1n)             # (B, H)  (== torch y1[:, 0, :])
    y2 = attn_seq1(x2n)

    H = x1n.shape[-1]
    # torch broadcast (B,H) + (B,1,H) -> (B,B,H): r[a, b, :] = xn[b] + y[a]
    r1 = (x1n[None, :, :] + y1[:, None, :]).reshape(B * B, H)
    r2 = (x2n[None, :, :] + y2[:, None, :]).reshape(B * B, H)

    # concat([r1, r2], -1) @ W3 == r1 @ W3[:H] + r2 @ W3[H:]
    # (W3 split host-side so no lane-axis concatenate/relayout in VMEM).
    h = (jnp.dot(r1, w3a_ref[...], preferred_element_type=jnp.float32) +
         jnp.dot(r2, w3b_ref[...], preferred_element_type=jnp.float32) +
         b3_ref[...])
    h = h * jax.nn.sigmoid(h)                       # SiLU (dropout = identity)
    out = jnp.dot(h, w4_ref[...], preferred_element_type=jnp.float32) + b4_ref[...]
    o_ref[...] = out.reshape(o_ref.shape)


# ----------------------------- full forward ----------------------------------
def trielan_forward(graph_feats, graph_adjs, shell_feats, shell_adjs, p):
    B = graph_feats.shape[0]
    H = p["g_w2"].shape[1]
    OUT = p["w4"].shape[1]

    # Host-side prep (fused under jit): split w3 so the kernel avoids a
    # lane-axis concatenate.
    w3a = p["w3"][:H]
    w3b = p["w3"][H:]

    args = (graph_feats, graph_adjs, shell_feats, shell_adjs,
            p["g_w1"], p["g_b1"], p["g_w2"], p["g_b2"],
            p["s_w1"], p["s_b1"], p["s_w2"], p["s_b2"],
            p["ln_g"], p["ln_b"], p["wv"], p["bv"], p["wo"], p["bo"],
            w3a, w3b, p["b3"], p["w4"], p["b4"])

    # No grid: every array lives whole in VMEM, kernel runs exactly once.
    return pl.pallas_call(
        trielan_kernel,
        out_shape=jax.ShapeDtypeStruct((B, B, OUT), jnp.float32),
        in_specs=[pl.BlockSpec(memory_space=pltpu.MemorySpace.VMEM)
                  for _ in args],
        out_specs=pl.BlockSpec(memory_space=pltpu.MemorySpace.VMEM),
    )(*args)


# --------------------------- pure-JAX reference ------------------------------
def reference(graph_feats, graph_adjs, shell_feats, shell_adjs, p):
    def gcn(feats, adjs, w1, b1, w2, b2):
        h = jnp.einsum("bij,bjk->bik", adjs, feats @ w1) + b1
        h = jnp.einsum("bij,bjk->bik", adjs, h @ w2) + b2
        return jnp.mean(h, axis=-2)

    g = gcn(graph_feats, graph_adjs, p["g_w1"], p["g_b1"], p["g_w2"], p["g_b2"])
    s = gcn(shell_feats, shell_adjs, p["s_w1"], p["s_b1"], p["s_w2"], p["s_b2"])

    def ln(x):
        mu = x.mean(-1, keepdims=True)
        var = ((x - mu) ** 2).mean(-1, keepdims=True)
        return (x - mu) / jnp.sqrt(var + 1e-5) * p["ln_g"] + p["ln_b"]

    def attn(x):
        v = x @ p["wv"] + p["bv"]
        return v @ p["wo"] + p["bo"]

    x1n, x2n = ln(g), ln(s)
    y1, y2 = attn(x1n), attn(x2n)
    x1 = x1n[None, :, :] + y1[:, None, :]
    x2 = x2n[None, :, :] + y2[:, None, :]
    x = jnp.concatenate([x1, x2], axis=-1)
    h = x @ p["w3"] + p["b3"]
    h = h * jax.nn.sigmoid(h)
    return h @ p["w4"] + p["b4"]


# --------------------------------- main ---------------------------------------
def _uniform(key, shape, scale):
    return jax.random.uniform(key, shape, jnp.float32, -scale, scale)


if __name__ == "__main__":
    # Small, module-consistent sizes: batch=2, node_num=10, nfeat=85 (hard-coded
    # in the module), nhid=512 (hard-coded), hidden_size=64, num_heads=4,
    # out_size=32.
    B, N, F, NH, H, OUT = 2, 10, 85, 512, 64, 32

    key = jax.random.PRNGKey(0)
    keys = jax.random.split(key, 20)

    params = {
        # GCN encoder1 (graph)
        "g_w1": _uniform(keys[0], (F, NH), 1.0 / jnp.sqrt(NH)),
        "g_b1": _uniform(keys[1], (1, NH), 1.0 / jnp.sqrt(NH)),
        "g_w2": _uniform(keys[2], (NH, H), 1.0 / jnp.sqrt(H)),
        "g_b2": _uniform(keys[3], (1, H), 1.0 / jnp.sqrt(H)),
        # GCN encoder2 (shell)
        "s_w1": _uniform(keys[4], (F, NH), 1.0 / jnp.sqrt(NH)),
        "s_b1": _uniform(keys[5], (1, NH), 1.0 / jnp.sqrt(NH)),
        "s_w2": _uniform(keys[6], (NH, H), 1.0 / jnp.sqrt(H)),
        "s_b2": _uniform(keys[7], (1, H), 1.0 / jnp.sqrt(H)),
        # ffn_norm1 LayerNorm (shared by x1 and x2) -- PyTorch default init
        "ln_g": jnp.ones((1, H), jnp.float32),
        "ln_b": jnp.zeros((1, H), jnp.float32),
        # self_attention: only linear_v and output_layer matter (seq_len == 1)
        "wv": _uniform(keys[8], (H, H), 1.0 / jnp.sqrt(H)),
        "bv": _uniform(keys[9], (1, H), 1.0 / jnp.sqrt(H)),
        "wo": _uniform(keys[10], (H, H), 1.0 / jnp.sqrt(H)),
        "bo": _uniform(keys[11], (1, H), 1.0 / jnp.sqrt(H)),
        # out_proj_old: Linear(2H, H), SiLU, Dropout, Linear(H, OUT)
        "w3": _uniform(keys[12], (2 * H, H), 1.0 / jnp.sqrt(2 * H)),
        "b3": _uniform(keys[13], (1, H), 1.0 / jnp.sqrt(2 * H)),
        "w4": _uniform(keys[14], (H, OUT), 1.0 / jnp.sqrt(H)),
        "b4": _uniform(keys[15], (1, OUT), 1.0 / jnp.sqrt(H)),
    }

    graph_feats = jax.random.normal(keys[16], (B, N, F), jnp.float32)
    graph_adjs = jax.random.uniform(keys[17], (B, N, N), jnp.float32)
    shell_feats = jax.random.normal(keys[18], (B, N, F), jnp.float32)
    shell_adjs = jax.random.uniform(keys[19], (B, N, N), jnp.float32)

    fwd = jax.jit(trielan_forward)
    out = fwd(graph_feats, graph_adjs, shell_feats, shell_adjs, params)
    out = jax.block_until_ready(out)

    ref = reference(graph_feats, graph_adjs, shell_feats, shell_adjs, params)
    assert out.shape == (B, B, OUT), out.shape
    assert jnp.allclose(out, ref, atol=2e-3, rtol=2e-3), (
        float(jnp.max(jnp.abs(out - ref))))

    print("KERNEL_OK")
</pallas_src>

<mosaic_0001>
module attributes {stable_mosaic.version = 11 : i64} {
  func.func @trielan_kernel(%arg0: memref<2x10x85xf32, #tpu.memory_space<vmem>>, %arg1: memref<2x10x10xf32, #tpu.memory_space<vmem>>, %arg2: memref<2x10x85xf32, #tpu.memory_space<vmem>>, %arg3: memref<2x10x10xf32, #tpu.memory_space<vmem>>, %arg4: memref<85x512xf32, #tpu.memory_space<vmem>>, %arg5: memref<1x512xf32, #tpu.memory_space<vmem>>, %arg6: memref<512x64xf32, #tpu.memory_space<vmem>>, %arg7: memref<1x64xf32, #tpu.memory_space<vmem>>, %arg8: memref<85x512xf32, #tpu.memory_space<vmem>>, %arg9: memref<1x512xf32, #tpu.memory_space<vmem>>, %arg10: memref<512x64xf32, #tpu.memory_space<vmem>>, %arg11: memref<1x64xf32, #tpu.memory_space<vmem>>, %arg12: memref<1x64xf32, #tpu.memory_space<vmem>>, %arg13: memref<1x64xf32, #tpu.memory_space<vmem>>, %arg14: memref<64x64xf32, #tpu.memory_space<vmem>>, %arg15: memref<1x64xf32, #tpu.memory_space<vmem>>, %arg16: memref<64x64xf32, #tpu.memory_space<vmem>>, %arg17: memref<1x64xf32, #tpu.memory_space<vmem>>, %arg18: memref<64x64xf32, #tpu.memory_space<vmem>>, %arg19: memref<64x64xf32, #tpu.memory_space<vmem>>, %arg20: memref<1x64xf32, #tpu.memory_space<vmem>>, %arg21: memref<64x32xf32, #tpu.memory_space<vmem>>, %arg22: memref<1x32xf32, #tpu.memory_space<vmem>>, %arg23: memref<2x2x32xf32, #tpu.memory_space<vmem>>) attributes {dimension_semantics = [], scalar_prefetch = 0 : i64, scratch_operands = 0 : i64, tpu.core_type = #tpu.core_type<tc>} {
    %c0 = arith.constant 0 : index
    %c0_0 = arith.constant 0 : index
    %c0_1 = arith.constant 0 : index
    %0 = vector.load %arg1[%c0, %c0_0, %c0_1] : memref<2x10x10xf32, #tpu.memory_space<vmem>>, vector<1x10x10xf32>
    %1 = vector.shape_cast %0 : vector<1x10x10xf32> to vector<10x10xf32>
    %cst = arith.constant dense<0.000000e+00> : vector<10xf32>
    %2 = vector.multi_reduction <add>, %1, %cst [0] : vector<10x10xf32> to vector<10xf32>
    %3 = vector.shape_cast %2 : vector<10xf32> to vector<1x10xf32>
    %cst_2 = arith.constant 1.000000e+01 : f32
    %4 = vector.broadcast %cst_2 : f32 to vector<1x10xf32>
    %5 = arith.divf %3, %4 : vector<1x10xf32>
    %cst_3 = arith.constant dense<0.000000e+00> : vector<1x10xf32>
    %6 = tpu.matmul %5, %1, %cst_3 {dimension_numbers = #tpu.dot_dimension_numbers<[1], [0], [0], [1], [0, 0, 1, 1], [], []>} : vector<1x10xf32>, vector<10x10xf32>, vector<1x10xf32> -> vector<1x10xf32>
    %c0_4 = arith.constant 0 : index
    %c0_5 = arith.constant 0 : index
    %c0_6 = arith.constant 0 : index
    %7 = vector.load %arg0[%c0_4, %c0_5, %c0_6] : memref<2x10x85xf32, #tpu.memory_space<vmem>>, vector<1x10x85xf32>
    %8 = vector.shape_cast %7 : vector<1x10x85xf32> to vector<10x85xf32>
    %cst_7 = arith.constant dense<0.000000e+00> : vector<1x85xf32>
    %9 = tpu.matmul %6, %8, %cst_7 {dimension_numbers = #tpu.dot_dimension_numbers<[1], [0], [0], [1], [0, 0, 1, 1], [], []>} : vector<1x10xf32>, vector<10x85xf32>, vector<1x85xf32> -> vector<1x85xf32>
    %cst_8 = arith.constant dense<0.000000e+00> : vector<1xf32>
    %10 = vector.multi_reduction <add>, %5, %cst_8 [1] : vector<1x10xf32> to vector<1xf32>
    %11 = vector.shape_cast %10 : vector<1xf32> to vector<1x1xf32>
    %c1 = arith.constant 1 : index
    %c0_9 = arith.constant 0 : index
    %c0_10 = arith.constant 0 : index
    %12 = vector.load %arg1[%c1, %c0_9, %c0_10] : memref<2x10x10xf32, #tpu.memory_space<vmem>>, vector<1x10x10xf32>
    %13 = vector.shape_cast %12 : vector<1x10x10xf32> to vector<10x10xf32>
    %cst_11 = arith.constant dense<0.000000e+00> : vector<10xf32>
    %14 = vector.multi_reduction <add>, %13, %cst_11 [0] : vector<10x10xf32> to vector<10xf32>
    %15 = vector.shape_cast %14 : vector<10xf32> to vector<1x10xf32>
    %cst_12 = arith.constant 1.000000e+01 : f32
    %16 = vector.broadcast %cst_12 : f32 to vector<1x10xf32>
    %17 = arith.divf %15, %16 : vector<1x10xf32>
    %cst_13 = arith.constant dense<0.000000e+00> : vector<1x10xf32>
    %18 = tpu.matmul %17, %13, %cst_13 {dimension_numbers = #tpu.dot_dimension_numbers<[1], [0], [0], [1], [0, 0, 1, 1], [], []>} : vector<1x10xf32>, vector<10x10xf32>, vector<1x10xf32> -> vector<1x10xf32>
    %c1_14 = arith.constant 1 : index
    %c0_15 = arith.constant 0 : index
    %c0_16 = arith.constant 0 : index
    %19 = vector.load %arg0[%c1_14, %c0_15, %c0_16] : memref<2x10x85xf32, #tpu.memory_space<vmem>>, vector<1x10x85xf32>
    %20 = vector.shape_cast %19 : vector<1x10x85xf32> to vector<10x85xf32>
    %cst_17 = arith.constant dense<0.000000e+00> : vector<1x85xf32>
    %21 = tpu.matmul %18, %20, %cst_17 {dimension_numbers = #tpu.dot_dimension_numbers<[1], [0], [0], [1], [0, 0, 1, 1], [], []>} : vector<1x10xf32>, vector<10x85xf32>, vector<1x85xf32> -> vector<1x85xf32>
    %cst_18 = arith.constant dense<0.000000e+00> : vector<1xf32>
    %22 = vector.multi_reduction <add>, %17, %cst_18 [1] : vector<1x10xf32> to vector<1xf32>
    %23 = vector.shape_cast %22 : vector<1xf32> to vector<1x1xf32>
    %24 = tpu.concatenate %9, %21 in 0 : vector<1x85xf32>, vector<1x85xf32> -> vector<2x85xf32>
    %25 = tpu.concatenate %11, %23 in 0 : vector<1x1xf32>, vector<1x1xf32> -> vector<2x1xf32>
    %c0_19 = arith.constant 0 : index
    %c0_20 = arith.constant 0 : index
    %26 = vector.load %arg4[%c0_19, %c0_20] : memref<85x512xf32, #tpu.memory_space<vmem>>, vector<85x512xf32>
    %cst_21 = arith.constant dense<0.000000e+00> : vector<2x512xf32>
    %27 = tpu.matmul %24, %26, %cst_21 {dimension_numbers = #tpu.dot_dimension_numbers<[1], [0], [0], [1], [0, 0, 1, 1], [], []>} : vector<2x85xf32>, vector<85x512xf32>, vector<2x512xf32> -> vector<2x512xf32>
    %c0_22 = arith.constant 0 : index
    %c0_23 = arith.constant 0 : index
    %28 = vector.load %arg5[%c0_22, %c0_23] : memref<1x512xf32, #tpu.memory_space<vmem>>, vector<1x512xf32>
    %29 = vector.broadcast %25 : vector<2x1xf32> to vector<2x512xf32>
    %30 = vector.broadcast %28 : vector<1x512xf32> to vector<2x512xf32>
    %31 = arith.mulf %29, %30 : vector<2x512xf32>
    %32 = arith.addf %27, %31 : vector<2x512xf32>
    %c0_24 = arith.constant 0 : index
    %c0_25 = arith.constant 0 : index
    %33 = vector.load %arg6[%c0_24, %c0_25] : memref<512x64xf32, #tpu.memory_space<vmem>>, vector<512x64xf32>
    %cst_26 = arith.constant dense<0.000000e+00> : vector<2x64xf32>
    %34 = tpu.matmul %32, %33, %cst_26 {dimension_numbers = #tpu.dot_dimension_numbers<[1], [0], [0], [1], [0, 0, 1, 1], [], []>} : vector<2x512xf32>, vector<512x64xf32>, vector<2x64xf32> -> vector<2x64xf32>
    %c0_27 = arith.constant 0 : index
    %c0_28 = arith.constant 0 : index
    %35 = vector.load %arg7[%c0_27, %c0_28] : memref<1x64xf32, #tpu.memory_space<vmem>>, vector<1x64xf32>
    %36 = vector.broadcast %35 : vector<1x64xf32> to vector<2x64xf32>
    %37 = arith.addf %34, %36 : vector<2x64xf32>
    %c0_29 = arith.constant 0 : index
    %c0_30 = arith.constant 0 : index
    %c0_31 = arith.constant 0 : index
    %38 = vector.load %arg3[%c0_29, %c0_30, %c0_31] : memref<2x10x10xf32, #tpu.memory_space<vmem>>, vector<1x10x10xf32>
    %39 = vector.shape_cast %38 : vector<1x10x10xf32> to vector<10x10xf32>
    %cst_32 = arith.constant dense<0.000000e+00> : vector<10xf32>
    %40 = vector.multi_reduction <add>, %39, %cst_32 [0] : vector<10x10xf32> to vector<10xf32>
    %41 = vector.shape_cast %40 : vector<10xf32> to vector<1x10xf32>
    %cst_33 = arith.constant 1.000000e+01 : f32
    %42 = vector.broadcast %cst_33 : f32 to vector<1x10xf32>
    %43 = arith.divf %41, %42 : vector<1x10xf32>
    %cst_34 = arith.constant dense<0.000000e+00> : vector<1x10xf32>
    %44 = tpu.matmul %43, %39, %cst_34 {dimension_numbers = #tpu.dot_dimension_numbers<[1], [0], [0], [1], [0, 0, 1, 1], [], []>} : vector<1x10xf32>, vector<10x10xf32>, vector<1x10xf32> -> vector<1x10xf32>
    %c0_35 = arith.constant 0 : index
    %c0_36 = arith.constant 0 : index
    %c0_37 = arith.constant 0 : index
    %45 = vector.load %arg2[%c0_35, %c0_36, %c0_37] : memref<2x10x85xf32, #tpu.memory_space<vmem>>, vector<1x10x85xf32>
    %46 = vector.shape_cast %45 : vector<1x10x85xf32> to vector<10x85xf32>
    %cst_38 = arith.constant dense<0.000000e+00> : vector<1x85xf32>
    %47 = tpu.matmul %44, %46, %cst_38 {dimension_numbers = #tpu.dot_dimension_numbers<[1], [0], [0], [1], [0, 0, 1, 1], [], []>} : vector<1x10xf32>, vector<10x85xf32>, vector<1x85xf32> -> vector<1x85xf32>
    %cst_39 = arith.constant dense<0.000000e+00> : vector<1xf32>
    %48 = vector.multi_reduction <add>, %43, %cst_39 [1] : vector<1x10xf32> to vector<1xf32>
    %49 = vector.shape_cast %48 : vector<1xf32> to vector<1x1xf32>
    %c1_40 = arith.constant 1 : index
    %c0_41 = arith.constant 0 : index
    %c0_42 = arith.constant 0 : index
    %50 = vector.load %arg3[%c1_40, %c0_41, %c0_42] : memref<2x10x10xf32, #tpu.memory_space<vmem>>, vector<1x10x10xf32>
    %51 = vector.shape_cast %50 : vector<1x10x10xf32> to vector<10x10xf32>
    %cst_43 = arith.constant dense<0.000000e+00> : vector<10xf32>
    %52 = vector.multi_reduction <add>, %51, %cst_43 [0] : vector<10x10xf32> to vector<10xf32>
    %53 = vector.shape_cast %52 : vector<10xf32> to vector<1x10xf32>
    %cst_44 = arith.constant 1.000000e+01 : f32
    %54 = vector.broadcast %cst_44 : f32 to vector<1x10xf32>
    %55 = arith.divf %53, %54 : vector<1x10xf32>
    %cst_45 = arith.constant dense<0.000000e+00> : vector<1x10xf32>
    %56 = tpu.matmul %55, %51, %cst_45 {dimension_numbers = #tpu.dot_dimension_numbers<[1], [0], [0], [1], [0, 0, 1, 1], [], []>} : vector<1x10xf32>, vector<10x10xf32>, vector<1x10xf32> -> vector<1x10xf32>
    %c1_46 = arith.constant 1 : index
    %c0_47 = arith.constant 0 : index
    %c0_48 = arith.constant 0 : index
    %57 = vector.load %arg2[%c1_46, %c0_47, %c0_48] : memref<2x10x85xf32, #tpu.memory_space<vmem>>, vector<1x10x85xf32>
    %58 = vector.shape_cast %57 : vector<1x10x85xf32> to vector<10x85xf32>
    %cst_49 = arith.constant dense<0.000000e+00> : vector<1x85xf32>
    %59 = tpu.matmul %56, %58, %cst_49 {dimension_numbers = #tpu.dot_dimension_numbers<[1], [0], [0], [1], [0, 0, 1, 1], [], []>} : vector<1x10xf32>, vector<10x85xf32>, vector<1x85xf32> -> vector<1x85xf32>
    %cst_50 = arith.constant dense<0.000000e+00> : vector<1xf32>
    %60 = vector.multi_reduction <add>, %55, %cst_50 [1] : vector<1x10xf32> to vector<1xf32>
    %61 = vector.shape_cast %60 : vector<1xf32> to vector<1x1xf32>
    %62 = tpu.concatenate %47, %59 in 0 : vector<1x85xf32>, vector<1x85xf32> -> vector<2x85xf32>
    %63 = tpu.concatenate %49, %61 in 0 : vector<1x1xf32>, vector<1x1xf32> -> vector<2x1xf32>
    %c0_51 = arith.constant 0 : index
    %c0_52 = arith.constant 0 : index
    %64 = vector.load %arg8[%c0_51, %c0_52] : memref<85x512xf32, #tpu.memory_space<vmem>>, vector<85x512xf32>
    %cst_53 = arith.constant dense<0.000000e+00> : vector<2x512xf32>
    %65 = tpu.matmul %62, %64, %cst_53 {dimension_numbers = #tpu.dot_dimension_numbers<[1], [0], [0], [1], [0, 0, 1, 1], [], []>} : vector<2x85xf32>, vector<85x512xf32>, vector<2x512xf32> -> vector<2x512xf32>
    %c0_54 = arith.constant 0 : index
    %c0_55 = arith.constant 0 : index
    %66 = vector.load %arg9[%c0_54, %c0_55] : memref<1x512xf32, #tpu.memory_space<vmem>>, vector<1x512xf32>
    %67 = vector.broadcast %63 : vector<2x1xf32> to vector<2x512xf32>
    %68 = vector.broadcast %66 : vector<1x512xf32> to vector<2x512xf32>
    %69 = arith.mulf %67, %68 : vector<2x512xf32>
    %70 = arith.addf %65, %69 : vector<2x512xf32>
    %c0_56 = arith.constant 0 : index
    %c0_57 = arith.constant 0 : index
    %71 = vector.load %arg10[%c0_56, %c0_57] : memref<512x64xf32, #tpu.memory_space<vmem>>, vector<512x64xf32>
    %cst_58 = arith.constant dense<0.000000e+00> : vector<2x64xf32>
    %72 = tpu.matmul %70, %71, %cst_58 {dimension_numbers = #tpu.dot_dimension_numbers<[1], [0], [0], [1], [0, 0, 1, 1], [], []>} : vector<2x512xf32>, vector<512x64xf32>, vector<2x64xf32> -> vector<2x64xf32>
    %c0_59 = arith.constant 0 : index
    %c0_60 = arith.constant 0 : index
    %73 = vector.load %arg11[%c0_59, %c0_60] : memref<1x64xf32, #tpu.memory_space<vmem>>, vector<1x64xf32>
    %74 = vector.broadcast %73 : vector<1x64xf32> to vector<2x64xf32>
    %75 = arith.addf %72, %74 : vector<2x64xf32>
    %cst_61 = arith.constant dense<0.000000e+00> : vector<2xf32>
    %76 = vector.multi_reduction <add>, %37, %cst_61 [1] : vector<2x64xf32> to vector<2xf32>
    %77 = vector.shape_cast %76 : vector<2xf32> to vector<2x1xf32>
    %cst_62 = arith.constant 6.400000e+01 : f32
    %78 = vector.broadcast %cst_62 : f32 to vector<2x1xf32>
    %79 = arith.divf %77, %78 : vector<2x1xf32>
    %80 = vector.broadcast %79 : vector<2x1xf32> to vector<2x64xf32>
    %81 = arith.subf %37, %80 : vector<2x64xf32>
    %82 = arith.mulf %81, %81 : vector<2x64xf32>
    %cst_63 = arith.constant dense<0.000000e+00> : vector<2xf32>
    %83 = vector.multi_reduction <add>, %82, %cst_63 [1] : vector<2x64xf32> to vector<2xf32>
    %84 = vector.shape_cast %83 : vector<2xf32> to vector<2x1xf32>
    %cst_64 = arith.constant 6.400000e+01 : f32
    %85 = vector.broadcast %cst_64 : f32 to vector<2x1xf32>
    %86 = arith.divf %84, %85 : vector<2x1xf32>
    %87 = vector.broadcast %79 : vector<2x1xf32> to vector<2x64xf32>
    %88 = arith.subf %37, %87 : vector<2x64xf32>
    %cst_65 = arith.constant 9.99999974E-6 : f32
    %89 = vector.broadcast %cst_65 : f32 to vector<2x1xf32>
    %90 = arith.addf %86, %89 : vector<2x1xf32>
    %91 = math.rsqrt %90 : vector<2x1xf32>
    %92 = vector.broadcast %91 : vector<2x1xf32> to vector<2x64xf32>
    %93 = arith.mulf %88, %92 : vector<2x64xf32>
    %c0_66 = arith.constant 0 : index
    %c0_67 = arith.constant 0 : index
    %94 = vector.load %arg12[%c0_66, %c0_67] : memref<1x64xf32, #tpu.memory_space<vmem>>, vector<1x64xf32>
    %95 = vector.broadcast %94 : vector<1x64xf32> to vector<2x64xf32>
    %96 = arith.mulf %93, %95 : vector<2x64xf32>
    %c0_68 = arith.constant 0 : index
    %c0_69 = arith.constant 0 : index
    %97 = vector.load %arg13[%c0_68, %c0_69] : memref<1x64xf32, #tpu.memory_space<vmem>>, vector<1x64xf32>
    %98 = vector.broadcast %97 : vector<1x64xf32> to vector<2x64xf32>
    %99 = arith.addf %96, %98 : vector<2x64xf32>
    %cst_70 = arith.constant dense<0.000000e+00> : vector<2xf32>
    %100 = vector.multi_reduction <add>, %75, %cst_70 [1] : vector<2x64xf32> to vector<2xf32>
    %101 = vector.shape_cast %100 : vector<2xf32> to vector<2x1xf32>
    %cst_71 = arith.constant 6.400000e+01 : f32
    %102 = vector.broadcast %cst_71 : f32 to vector<2x1xf32>
    %103 = arith.divf %101, %102 : vector<2x1xf32>
    %104 = vector.broadcast %103 : vector<2x1xf32> to vector<2x64xf32>
    %105 = arith.subf %75, %104 : vector<2x64xf32>
    %106 = arith.mulf %105, %105 : vector<2x64xf32>
    %cst_72 = arith.constant dense<0.000000e+00> : vector<2xf32>
    %107 = vector.multi_reduction <add>, %106, %cst_72 [1] : vector<2x64xf32> to vector<2xf32>
    %108 = vector.shape_cast %107 : vector<2xf32> to vector<2x1xf32>
    %cst_73 = arith.constant 6.400000e+01 : f32
    %109 = vector.broadcast %cst_73 : f32 to vector<2x1xf32>
    %110 = arith.divf %108, %109 : vector<2x1xf32>
    %111 = vector.broadcast %103 : vector<2x1xf32> to vector<2x64xf32>
    %112 = arith.subf %75, %111 : vector<2x64xf32>
    %cst_74 = arith.constant 9.99999974E-6 : f32
    %113 = vector.broadcast %cst_74 : f32 to vector<2x1xf32>
    %114 = arith.addf %110, %113 : vector<2x1xf32>
    %115 = math.rsqrt %114 : vector<2x1xf32>
    %116 = vector.broadcast %115 : vector<2x1xf32> to vector<2x64xf32>
    %117 = arith.mulf %112, %116 : vector<2x64xf32>
    %c0_75 = arith.constant 0 : index
    %c0_76 = arith.constant 0 : index
    %118 = vector.load %arg12[%c0_75, %c0_76] : memref<1x64xf32, #tpu.memory_space<vmem>>, vector<1x64xf32>
    %119 = vector.broadcast %118 : vector<1x64xf32> to vector<2x64xf32>
    %120 = arith.mulf %117, %119 : vector<2x64xf32>
    %c0_77 = arith.constant 0 : index
    %c0_78 = arith.constant 0 : index
    %121 = vector.load %arg13[%c0_77, %c0_78] : memref<1x64xf32, #tpu.memory_space<vmem>>, vector<1x64xf32>
    %122 = vector.broadcast %121 : vector<1x64xf32> to vector<2x64xf32>
    %123 = arith.addf %120, %122 : vector<2x64xf32>
    %c0_79 = arith.constant 0 : index
    %c0_80 = arith.constant 0 : index
    %124 = vector.load %arg14[%c0_79, %c0_80] : memref<64x64xf32, #tpu.memory_space<vmem>>, vector<64x64xf32>
    %cst_81 = arith.constant dense<0.000000e+00> : vector<2x64xf32>
    %125 = tpu.matmul %99, %124, %cst_81 {dimension_numbers = #tpu.dot_dimension_numbers<[1], [0], [0], [1], [0, 0, 1, 1], [], []>} : vector<2x64xf32>, vector<64x64xf32>, vector<2x64xf32> -> vector<2x64xf32>
    %c0_82 = arith.constant 0 : index
    %c0_83 = arith.constant 0 : index
    %126 = vector.load %arg15[%c0_82, %c0_83] : memref<1x64xf32, #tpu.memory_space<vmem>>, vector<1x64xf32>
    %127 = vector.broadcast %126 : vector<1x64xf32> to vector<2x64xf32>
    %128 = arith.addf %125, %127 : vector<2x64xf32>
    %c0_84 = arith.constant 0 : index
    %c0_85 = arith.constant 0 : index
    %129 = vector.load %arg16[%c0_84, %c0_85] : memref<64x64xf32, #tpu.memory_space<vmem>>, vector<64x64xf32>
    %cst_86 = arith.constant dense<0.000000e+00> : vector<2x64xf32>
    %130 = tpu.matmul %128, %129, %cst_86 {dimension_numbers = #tpu.dot_dimension_numbers<[1], [0], [0], [1], [0, 0, 1, 1], [], []>} : vector<2x64xf32>, vector<64x64xf32>, vector<2x64xf32> -> vector<2x64xf32>
    %c0_87 = arith.constant 0 : index
    %c0_88 = arith.constant 0 : index
    %131 = vector.load %arg17[%c0_87, %c0_88] : memref<1x64xf32, #tpu.memory_space<vmem>>, vector<1x64xf32>
    %132 = vector.broadcast %131 : vector<1x64xf32> to vector<2x64xf32>
    %133 = arith.addf %130, %132 : vector<2x64xf32>
    %c0_89 = arith.constant 0 : index
    %c0_90 = arith.constant 0 : index
    %134 = vector.load %arg14[%c0_89, %c0_90] : memref<64x64xf32, #tpu.memory_space<vmem>>, vector<64x64xf32>
    %cst_91 = arith.constant dense<0.000000e+00> : vector<2x64xf32>
    %135 = tpu.matmul %123, %134, %cst_91 {dimension_numbers = #tpu.dot_dimension_numbers<[1], [0], [0], [1], [0, 0, 1, 1], [], []>} : vector<2x64xf32>, vector<64x64xf32>, vector<2x64xf32> -> vector<2x64xf32>
    %c0_92 = arith.constant 0 : index
    %c0_93 = arith.constant 0 : index
    %136 = vector.load %arg15[%c0_92, %c0_93] : memref<1x64xf32, #tpu.memory_space<vmem>>, vector<1x64xf32>
    %137 = vector.broadcast %136 : vector<1x64xf32> to vector<2x64xf32>
    %138 = arith.addf %135, %137 : vector<2x64xf32>
    %c0_94 = arith.constant 0 : index
    %c0_95 = arith.constant 0 : index
    %139 = vector.load %arg16[%c0_94, %c0_95] : memref<64x64xf32, #tpu.memory_space<vmem>>, vector<64x64xf32>
    %cst_96 = arith.constant dense<0.000000e+00> : vector<2x64xf32>
    %140 = tpu.matmul %138, %139, %cst_96 {dimension_numbers = #tpu.dot_dimension_numbers<[1], [0], [0], [1], [0, 0, 1, 1], [], []>} : vector<2x64xf32>, vector<64x64xf32>, vector<2x64xf32> -> vector<2x64xf32>
    %c0_97 = arith.constant 0 : index
    %c0_98 = arith.constant 0 : index
    %141 = vector.load %arg17[%c0_97, %c0_98] : memref<1x64xf32, #tpu.memory_space<vmem>>, vector<1x64xf32>
    %142 = vector.broadcast %141 : vector<1x64xf32> to vector<2x64xf32>
    %143 = arith.addf %140, %142 : vector<2x64xf32>
    %144 = vector.shape_cast %99 : vector<2x64xf32> to vector<1x2x64xf32>
    %145 = vector.shape_cast %133 : vector<2x64xf32> to vector<2x1x64xf32>
    %146 = vector.broadcast %144 : vector<1x2x64xf32> to vector<2x2x64xf32>
    %147 = vector.broadcast %145 : vector<2x1x64xf32> to vector<2x2x64xf32>
    %148 = arith.addf %146, %147 : vector<2x2x64xf32>
    %149 = vector.shape_cast %148 : vector<2x2x64xf32> to vector<4x64xf32>
    %150 = vector.shape_cast %123 : vector<2x64xf32> to vector<1x2x64xf32>
    %151 = vector.shape_cast %143 : vector<2x64xf32> to vector<2x1x64xf32>
    %152 = vector.broadcast %150 : vector<1x2x64xf32> to vector<2x2x64xf32>
    %153 = vector.broadcast %151 : vector<2x1x64xf32> to vector<2x2x64xf32>
    %154 = arith.addf %152, %153 : vector<2x2x64xf32>
    %155 = vector.shape_cast %154 : vector<2x2x64xf32> to vector<4x64xf32>
    %c0_99 = arith.constant 0 : index
    %c0_100 = arith.constant 0 : index
    %156 = vector.load %arg18[%c0_99, %c0_100] : memref<64x64xf32, #tpu.memory_space<vmem>>, vector<64x64xf32>
    %cst_101 = arith.constant dense<0.000000e+00> : vector<4x64xf32>
    %157 = tpu.matmul %149, %156, %cst_101 {dimension_numbers = #tpu.dot_dimension_numbers<[1], [0], [0], [1], [0, 0, 1, 1], [], []>} : vector<4x64xf32>, vector<64x64xf32>, vector<4x64xf32> -> vector<4x64xf32>
    %c0_102 = arith.constant 0 : index
    %c0_103 = arith.constant 0 : index
    %158 = vector.load %arg19[%c0_102, %c0_103] : memref<64x64xf32, #tpu.memory_space<vmem>>, vector<64x64xf32>
    %cst_104 = arith.constant dense<0.000000e+00> : vector<4x64xf32>
    %159 = tpu.matmul %155, %158, %cst_104 {dimension_numbers = #tpu.dot_dimension_numbers<[1], [0], [0], [1], [0, 0, 1, 1], [], []>} : vector<4x64xf32>, vector<64x64xf32>, vector<4x64xf32> -> vector<4x64xf32>
    %160 = arith.addf %157, %159 : vector<4x64xf32>
    %c0_105 = arith.constant 0 : index
    %c0_106 = arith.constant 0 : index
    %161 = vector.load %arg20[%c0_105, %c0_106] : memref<1x64xf32, #tpu.memory_space<vmem>>, vector<1x64xf32>
    %162 = vector.broadcast %161 : vector<1x64xf32> to vector<4x64xf32>
    %163 = arith.addf %160, %162 : vector<4x64xf32>
    %164 = arith.negf %163 : vector<4x64xf32>
    %165 = math.exp %164 : vector<4x64xf32>
    %cst_107 = arith.constant 1.000000e+00 : f32
    %166 = vector.broadcast %cst_107 : f32 to vector<4x64xf32>
    %167 = arith.addf %166, %165 : vector<4x64xf32>
    %168 = arith.divf %166, %167 : vector<4x64xf32>
    %169 = arith.mulf %163, %168 : vector<4x64xf32>
    %c0_108 = arith.constant 0 : index
    %c0_109 = arith.constant 0 : index
    %170 = vector.load %arg21[%c0_108, %c0_109] : memref<64x32xf32, #tpu.memory_space<vmem>>, vector<64x32xf32>
    %cst_110 = arith.constant dense<0.000000e+00> : vector<4x32xf32>
    %171 = tpu.matmul %169, %170, %cst_110 {dimension_numbers = #tpu.dot_dimension_numbers<[1], [0], [0], [1], [0, 0, 1, 1], [], []>} : vector<4x64xf32>, vector<64x32xf32>, vector<4x32xf32> -> vector<4x32xf32>
    %c0_111 = arith.constant 0 : index
    %c0_112 = arith.constant 0 : index
    %172 = vector.load %arg22[%c0_111, %c0_112] : memref<1x32xf32, #tpu.memory_space<vmem>>, vector<1x32xf32>
    %173 = vector.broadcast %172 : vector<1x32xf32> to vector<4x32xf32>
    %174 = arith.addf %171, %173 : vector<4x32xf32>
    %175 = vector.shape_cast %174 : vector<4x32xf32> to vector<2x2x32xf32>
    %c0_113 = arith.constant 0 : index
    %c0_114 = arith.constant 0 : index
    %c0_115 = arith.constant 0 : index
    %176 = vector.load %arg23[%c0_113, %c0_114, %c0_115] : memref<2x2x32xf32, #tpu.memory_space<vmem>>, vector<2x2x32xf32>
    tpu.vector_store %arg23[%c0_113, %c0_114, %c0_115], %175 {strides = array<i32>} : memref<2x2x32xf32, #tpu.memory_space<vmem>>, vector<2x2x32xf32>,
    return
  }
}

</mosaic_0001>

<bundles_post_ra>
// kernel: trielan_forward.1
= control target key start
LH: loop header
LB: loop body
LE: loop exit
PB: predicated region body
PF: predicated region fallthrough
CT: control target
= control target key end

     0   :  { %s2513_s0 = inlined_call_operand.vmem [shape: f32[2,10,85], index: 0, kind: input, shape index: {}]   ;;  %s2514_s1 = inlined_call_operand.vmem [shape: f32[2,10,10], index: 1, kind: input, shape index: {}]   ;;  %s2515_s2 = inlined_call_operand.vmem [shape: f32[2,10,85], index: 2, kind: input, shape index: {}]   ;;  %s2516_s3 = inlined_call_operand.vmem [shape: f32[2,10,10], index: 3, kind: input, shape index: {}]   ;;  %s2517_s4 = inlined_call_operand.vmem [shape: f32[85,512], index: 4, kind: input, shape index: {}]   ;;  %s2518_s5 = inlined_call_operand.vmem [shape: f32[1,512], index: 5, kind: input, shape index: {}]   ;;  %s2519_s6 = inlined_call_operand.vmem [shape: f32[512,64], index: 6, kind: input, shape index: {}]   ;;  %s2520_s7 = inlined_call_operand.vmem [shape: f32[1,64], index: 7, kind: input, shape index: {}]   ;;  %s2521_s8 = inlined_call_operand.vmem [shape: f32[85,512], index: 8, kind: input, shape index: {}]   ;;  %s2522_s9 = inlined_call_operand.vmem [shape: f32[1,512], index: 9, kind: input, shape index: {}]   ;;  %s2523_s10 = inlined_call_operand.vmem [shape: f32[512,64], index: 10, kind: input, shape index: {}]   ;;  %s2524_s11 = inlined_call_operand.vmem [shape: f32[1,64], index: 11, kind: input, shape index: {}]   ;;  %s2525_s12 = inlined_call_operand.vmem [shape: f32[1,64], index: 12, kind: input, shape index: {}]   ;;  %s2526_s13 = inlined_call_operand.vmem [shape: f32[1,64], index: 13, kind: input, shape index: {}]   ;;  %s2527_s14 = inlined_call_operand.vmem [shape: f32[64,64], index: 14, kind: input, shape index: {}]   ;;  %s2528_s15 = inlined_call_operand.vmem [shape: f32[1,64], index: 15, kind: input, shape index: {}]   ;;  %s2529_s16 = inlined_call_operand.vmem [shape: f32[64,64], index: 16, kind: input, shape index: {}]   ;;  %s2530_s17 = inlined_call_operand.vmem [shape: f32[1,64], index: 17, kind: input, shape index: {}]   ;;  %s2531_s18 = inlined_call_operand.vmem [shape: f32[64,64], index: 18, kind: input, shape index: {}]   ;;  %s2532_s19 = inlined_call_operand.vmem [shape: f32[64,64], index: 19, kind: input, shape index: {}]   ;;  %s2533_s20 = inlined_call_operand.vmem [shape: f32[1,64], index: 20, kind: input, shape index: {}]   ;;  %s2534_s21 = inlined_call_operand.vmem [shape: f32[64,32], index: 21, kind: input, shape index: {}]   ;;  %s2535_s22 = inlined_call_operand.vmem [shape: f32[1,32], index: 22, kind: input, shape index: {}]   ;;  %s2536_s23 = inlined_call_operand.hbm [shape: f32[2,2,32], index: 23, kind: output, shape index: {}]  }
   0x1   :  { %2543 = sst [smem:[#allocation5_spill]] %s2513_s0 }
   0x2   :  { %2544 = sst [smem:[#allocation6_spill]] %s2514_s1 }
   0x3   :  { %2545 = sst [smem:[#allocation7_spill]] %s2515_s2 }
   0x4   :  { %2546 = sst [smem:[#allocation8_spill]] %s2516_s3 }
   0x5   :  { %2547 = sst [smem:[#allocation9_spill]] %s2517_s4 }
   0x6   :  { %2548 = sst [smem:[#allocation10_spill]] %s2518_s5 }
   0x7   :  { %2549 = sst [smem:[#allocation11_spill]] %s2519_s6 }
   0x8   :  { %2550 = sst [smem:[#allocation12_spill]] %s2520_s7 }
   0x9   :  { %vm79_vm0 = vcmask 74752   ;;  %vm99_vm1 = vcmask 1041408   ;;  %s2551_s24 = sld [smem:[#allocation6_spill]]  ;;  %vm77_vm2 = vcmask 80896   ;;  %v1446_v7 = vmov 10.0  }
   0xa   :  { %1408 = vrcp.f32 %v1446_v7  ;;  %s2552_s28 = sld [smem:[#allocation5_spill]] }
   0xf   :  { %v1348_v0 = vld [vmem:[%s2551_s24 + $0x18] sm:$0x3]  ;;  %v1347_v1 = vld [vmem:[%s2551_s24 + $0x10] sm:$0xff]  ;;  %v76_v4 = vld [vmem:[%s2551_s24 + $0x8] sm:$0x3] }
  0x10   :  { %v158_v2 = vsel %vm79_vm0, %v1348_v0, 0.0  ;;  %1349 = vmatpush.msk.msra.mxu2 %vm99_vm1, %v1348_v0  ;;  %v157_v3 = vsel %vm77_vm2, %v1347_v1, 0.0  ;;  %v75_v5 = vld [vmem:[%s2551_s24] sm:$0xff]  ;;  %v80_v8 = vsel %vm79_vm0, %v76_v4, 0.0  ;;  %1343 = vmatpush.msk.msra.mxu0 %vm99_vm1, %v76_v4  ;;  %v1352_v10 = vld [vmem:[%s2552_s28 + $0x18] sm:$0x3] }
  0x11   :  { %v159_v6 = vadd.f32 %v158_v2, %v157_v3  ;;  %v78_v9 = vsel %vm77_vm2, %v75_v5, 0.0  ;;  %1353 = vmatpush.msk.msra.mxu3 %vm99_vm1, %v1352_v10 }
  0x12   :  { %188 = vmatpush.msra.mxu2 %v1347_v1  ;;  %v81_v11 = vadd.f32 %v80_v8, %v78_v9  ;;  %118 = vmatpush.msra.mxu0 %v75_v5 }
  0x13   :  { %v160_v12 = vrot.slane %v159_v6, 4 }
  0x14   :  { %v82_v13 = vrot.slane %v81_v11, 4 }
  0x15   :  { %v161_v14 = vadd.f32 %v160_v12, %v159_v6 }
  0x16   :  { %28 = vsyncpa [#allocation3], 0  ;;  %v83_v15 = vadd.f32 %v82_v13, %v81_v11  ;;  %v1409_v16 = vpop.eup %1408  ;;  %v1351_v32 = vld [vmem:[%s2552_s28 + $0x10] sm:$0xff]  ;;  %v124_v33 = vld [vmem:[%s2552_s28 + $0x8] sm:$0x3]  ;;  %vm298_vm4 = vcmask 1044480  }
  0x17   :  { %v162_v17 = vrot.slane %v161_v14, 2  ;;  %v89_v18 = vmul.f32 10.0, %v1409_v16  ;;  %vm93_vm3 = vweird.f32 %v1409_v16  ;;  %217 = vmatpush.msra.mxu3 %v1351_v32  ;;  %v123_v34 = vld [vmem:[%s2552_s28] sm:$0xff]  ;;  %1345 = vmatpush.msk.msra.mxu1 %vm99_vm1, %v124_v33  ;;  %s2553_s1 = sld [smem:[#allocation9_spill]]  ;;  %vm228_vm5 = vcmask 1040384   ;;  %s1451_s25 = smov 2  }
  0x18   :  { %v84_v19 = vrot.slane %v83_v15, 2  ;;  %s2554_s7 = sld [smem:[#allocation11_spill]]  ;;  %vm294_vm6 = vcmask 695296   ;;  %vm990_vm7 = vcmask 517120   ;;  %vm1066_vm13 = vcmask 523264  }
  0x19   :  { %v163_v20 = vadd.f32 %v162_v17, %v161_v14  ;;  %v90_v21 = vsub.f32 1.0, %v89_v18  ;;  %146 = vmatpush.msra.mxu1 %v123_v34  ;;  %s2555_s3 = sld [smem:[#allocation8_spill]] }
  0x1a   :  { %v85_v22 = vadd.f32 %v84_v19, %v83_v15  ;;  %s2556_s26 = sld [smem:[#allocation10_spill]] }
  0x1b   :  { %v164_v23 = vrot.slane %v163_v20, 1  ;;  %v91_v24 = vmul.f32 %v1409_v16, %v90_v21  ;;  %s2557_s27 = sld [smem:[#allocation7_spill]] }
  0x1c   :  { %v86_v25 = vrot.slane %v85_v22, 1  ;;  %s2558_s30 = sld [smem:[#allocation12_spill]] }
  0x1d   :  { %v165_v26 = vadd.f32 %v164_v23, %v163_v20  ;;  %v92_v27 = vadd.f32 %v1409_v16, %v91_v24  ;;  %v271_v36 = vld [vmem:[%s2553_s1 + $0x140] sm:$0x1f]  ;;  %v272_v37 = vld [vmem:[%s2553_s1 + $0x148] sm:$0x1f]  ;;  %v273_v38 = vld [vmem:[%s2553_s1 + $0x150] sm:$0x1f] }
  0x1e   :  { %v87_v28 = vadd.f32 %v86_v25, %v85_v22  ;;  %1355 = vmatpush.msk.msrb.mxu0 %vm298_vm4, %v271_v36  ;;  %1359 = vmatpush.msk.msrb.mxu2 %vm298_vm4, %v273_v38  ;;  %v274_v39 = vld [vmem:[%s2553_s1 + $0x158] sm:$0x1f]  ;;  %v267_v40 = vld [vmem:[%s2553_s1 + $0x120] sm:$0xff]  ;;  %v268_v41 = vld [vmem:[%s2553_s1 + $0x128] sm:$0xff]  ;;  %v1447_v23 = vmov 0  }
  0x1f   :  { %v1594_v29 = vsel %vm93_vm3, %v1409_v16, %v92_v27  ;;  %1361 = vmatpush.msk.msrb.mxu3 %vm298_vm4, %v274_v39  ;;  %v269_v42 = vld [vmem:[%s2553_s1 + $0x130] sm:$0xff]  ;;  %v270_v43 = vld [vmem:[%s2553_s1 + $0x138] sm:$0xff]  ;;  %v263_v44 = vld [vmem:[%s2553_s1 + $0x100] sm:$0xff]  ;;  %1357 = vmatpush.msk.msrb.mxu1 %vm298_vm4, %v272_v37 }
  0x20   :  { %v166_v30 = vmul.f32 %v165_v26, %v1594_v29  ;;  %v95_v31 = vmul.f32 %v1594_v29, %v87_v28  ;;  %317 = vmatpush.msrb.mxu0 %v267_v40  ;;  %v265_v45 = vld [vmem:[%s2553_s1 + $0x110] sm:$0xff]  ;;  %v266_v46 = vld [vmem:[%s2553_s1 + $0x118] sm:$0xff]  ;;  %357 = vmatpush.msrb.mxu2 %v269_v42  ;;  %v264_v47 = vld [vmem:[%s2553_s1 + $0x108] sm:$0xff] }
  0x21   :  { %377 = vmatpush.msrb.mxu3 %v270_v43  ;;  %v259_v48 = vld [vmem:[%s2553_s1 + $0xe0] sm:$0xff]  ;;  %337 = vmatpush.msrb.mxu1 %v268_v41  ;;  %v261_v50 = vld [vmem:[%s2553_s1 + $0xf0] sm:$0xff]  ;;  %v260_v51 = vld [vmem:[%s2553_s1 + $0xe8] sm:$0xff] }
  0x22   :  { %1350 = vmatmul.msk.f32.vlgmr.msra.gmra.mxu2 %vm77_vm2, %v166_v30  ;;  %1344 = vmatmul.msk.f32.vlgmr.msra.gmra.mxu0 %vm77_vm2, %v95_v31  ;;  %v151_v35 = vsel %vm77_vm2, %v95_v31, 0.0  ;;  %v222_v49 = vsel %vm77_vm2, %v166_v30, 0.0  ;;  %v262_v52 = vld [vmem:[%s2553_s1 + $0xf8] sm:$0xff]  ;;  %v255_v53 = vld [vmem:[%s2553_s1 + $0xc0] sm:$0xff]  ;;  %v257_v54 = vld [vmem:[%s2553_s1 + $0xd0] sm:$0xff] }
  0x23   :  { %152 = vadd.xlane.f32.xlu0 %v151_v35  ;;  %318 = vmatpush.msrb.mxu0 %v263_v44  ;;  %v256_v55 = vld [vmem:[%s2553_s1 + $0xc8] sm:$0xff]  ;;  %v258_v56 = vld [vmem:[%s2553_s1 + $0xd8] sm:$0xff]  ;;  %v251_v57 = vld [vmem:[%s2553_s1 + $0xa0] sm:$0xff] }
  0x24   :  { %358 = vmatpush.msrb.mxu2 %v265_v45  ;;  %378 = vmatpush.msrb.mxu3 %v266_v46  ;;  %v253_v58 = vld [vmem:[%s2553_s1 + $0xb0] sm:$0xff]  ;;  %v252_v59 = vld [vmem:[%s2553_s1 + $0xa8] sm:$0xff]  ;;  %v254_v60 = vld [vmem:[%s2553_s1 + $0xb8] sm:$0xff] }
  0x25   :  { %338 = vmatpush.msrb.mxu1 %v264_v47  ;;  %319 = vmatpush.msrb.mxu0 %v259_v48  ;;  %v247_v61 = vld [vmem:[%s2553_s1 + $0x80] sm:$0xff]  ;;  %v249_v62 = vld [vmem:[%s2553_s1 + $0x90] sm:$0xff]  ;;  %v248_v63 = vld [vmem:[%s2553_s1 + $0x88] sm:$0xff] }
  0x26   :  { %359 = vmatpush.msrb.mxu2 %v261_v50  ;;  %379 = vmatpush.msrb.mxu3 %v262_v52  ;;  %v250_v0 = vld [vmem:[%s2553_s1 + $0x98] sm:$0xff]  ;;  %v243_v1 = vld [vmem:[%s2553_s1 + $0x60] sm:$0xff]  ;;  %v245_v2 = vld [vmem:[%s2553_s1 + $0x70] sm:$0xff] }
  0x27   :  { %339 = vmatpush.msrb.mxu1 %v260_v51  ;;  %320 = vmatpush.msrb.mxu0 %v255_v53  ;;  %v244_v3 = vld [vmem:[%s2553_s1 + $0x68] sm:$0xff]  ;;  %v246_v4 = vld [vmem:[%s2553_s1 + $0x78] sm:$0xff]  ;;  %v239_v5 = vld [vmem:[%s2553_s1 + $0x40] sm:$0xff] }
  0x28   :  { %360 = vmatpush.msrb.mxu2 %v257_v54  ;;  %380 = vmatpush.msrb.mxu3 %v258_v56  ;;  %v241_v6 = vld [vmem:[%s2553_s1 + $0x50] sm:$0xff]  ;;  %v240_v7 = vld [vmem:[%s2553_s1 + $0x48] sm:$0xff]  ;;  %v242_v8 = vld [vmem:[%s2553_s1 + $0x58] sm:$0xff] }
  0x29   :  { %340 = vmatpush.msrb.mxu1 %v256_v55  ;;  %321 = vmatpush.msrb.mxu0 %v251_v57  ;;  %v235_v11 = vld [vmem:[%s2553_s1 + $0x20] sm:$0xff]  ;;  %v236_v12 = vld [vmem:[%s2553_s1 + $0x28] sm:$0xff]  ;;  %v237_v13 = vld [vmem:[%s2553_s1 + $0x30] sm:$0xff] }
  0x2a   :  { %361 = vmatpush.msrb.mxu2 %v253_v58  ;;  %381 = vmatpush.msrb.mxu3 %v254_v60  ;;  %v238_v14 = vld [vmem:[%s2553_s1 + $0x38] sm:$0xff]  ;;  %v231_v16 = vld [vmem:[%s2553_s1] sm:$0xff]  ;;  %v232_v17 = vld [vmem:[%s2553_s1 + $0x8] sm:$0xff] }
  0x2b   :  { %223 = vadd.xlane.f32.xlu0 %v222_v49  ;;  %341 = vmatpush.msrb.mxu1 %v252_v59  ;;  %v233_v18 = vld [vmem:[%s2553_s1 + $0x10] sm:$0xff]  ;;  %v234_v19 = vld [vmem:[%s2553_s1 + $0x18] sm:$0xff]  ;;  %v404_v25 = vld [vmem:[%s2554_s7 + $0x68] sm:$0xff] }
  0x2c   :  { %322 = vmatpush.msrb.mxu0 %v247_v61  ;;  %362 = vmatpush.msrb.mxu2 %v249_v62  ;;  %v406_v20 = vld [vmem:[%s2554_s7 + $0x78] sm:$0xff]  ;;  %v405_v22 = vld [vmem:[%s2554_s7 + $0x70] sm:$0xff]  ;;  %v420_v27 = vld [vmem:[%s2554_s7 + $0xe8] sm:$0xff] }
  0x2d   :  { %342 = vmatpush.msrb.mxu1 %v248_v63  ;;  %382 = vmatpush.msrb.mxu3 %v250_v0  ;;  %v422_v21 = vld [vmem:[%s2554_s7 + $0xf8] sm:$0xff]  ;;  %v421_v24 = vld [vmem:[%s2554_s7 + $0xf0] sm:$0xff]  ;;  %v403_v31 = vld [vmem:[%s2554_s7 + $0x60] sm:$0xff] }
  0x2e   :  { %323 = vmatpush.msrb.mxu0 %v243_v1  ;;  %363 = vmatpush.msrb.mxu2 %v245_v2  ;;  %v438_v26 = vld [vmem:[%s2554_s7 + $0x178] sm:$0xff]  ;;  %v437_v32 = vld [vmem:[%s2554_s7 + $0x170] sm:$0xff]  ;;  %v419_v35 = vld [vmem:[%s2554_s7 + $0xe0] sm:$0xff] }
  0x2f   :  { %343 = vmatpush.msrb.mxu1 %v244_v3  ;;  %383 = vmatpush.msrb.mxu3 %v246_v4  ;;  %v454_v28 = vld [vmem:[%s2554_s7 + $0x1f8] sm:$0xff]  ;;  %v453_v33 = vld [vmem:[%s2554_s7 + $0x1f0] sm:$0xff]  ;;  %v436_v36 = vld [vmem:[%s2554_s7 + $0x168] sm:$0xff] }
  0x30   :  { %324 = vmatpush.msrb.mxu0 %v239_v5  ;;  %364 = vmatpush.msrb.mxu2 %v241_v6  ;;  %v402_v37 = vld [vmem:[%s2554_s7 + $0x58] sm:$0xff]  ;;  %v452_v38 = vld [vmem:[%s2554_s7 + $0x1e8] sm:$0xff]  ;;  %v435_v40 = vld [vmem:[%s2554_s7 + $0x160] sm:$0xff] }
  0x31   :  { %344 = vmatpush.msrb.mxu1 %v240_v7  ;;  %384 = vmatpush.msrb.mxu3 %v242_v8  ;;  %v418_v39 = vld [vmem:[%s2554_s7 + $0xd8] sm:$0xff]  ;;  %v401_v41 = vld [vmem:[%s2554_s7 + $0x50] sm:$0xff]  ;;  %v451_v42 = vld [vmem:[%s2554_s7 + $0x1e0] sm:$0xff] }
  0x32   :  { %325 = vmatpush.msrb.mxu0 %v235_v11  ;;  %365 = vmatpush.msrb.mxu2 %v237_v13  ;;  %v417_v43 = vld [vmem:[%s2554_s7 + $0xd0] sm:$0xff]  ;;  %v434_v44 = vld [vmem:[%s2554_s7 + $0x158] sm:$0xff]  ;;  %v400_v45 = vld [vmem:[%s2554_s7 + $0x48] sm:$0xff] }
  0x33   :  { %345 = vmatpush.msrb.mxu1 %v236_v12  ;;  %385 = vmatpush.msrb.mxu3 %v238_v14  ;;  %v450_v46 = vld [vmem:[%s2554_s7 + $0x1d8] sm:$0xff]  ;;  %v416_v47 = vld [vmem:[%s2554_s7 + $0xc8] sm:$0xff]  ;;  %v433_v48 = vld [vmem:[%s2554_s7 + $0x150] sm:$0xff] }
  0x34   :  { %326 = vmatpush.msrb.mxu0 %v231_v16  ;;  %366 = vmatpush.msrb.mxu2 %v233_v18  ;;  %v399_v49 = vld [vmem:[%s2554_s7 + $0x40] sm:$0xff]  ;;  %v449_v50 = vld [vmem:[%s2554_s7 + $0x1d0] sm:$0xff]  ;;  %v432_v52 = vld [vmem:[%s2554_s7 + $0x148] sm:$0xff] }
  0x35   :  { %346 = vmatpush.msrb.mxu1 %v232_v17  ;;  %386 = vmatpush.msrb.mxu3 %v234_v19  ;;  %v415_v51 = vld [vmem:[%s2554_s7 + $0xc0] sm:$0xff]  ;;  %v398_v53 = vld [vmem:[%s2554_s7 + $0x38] sm:$0xff]  ;;  %v448_v54 = vld [vmem:[%s2554_s7 + $0x1c8] sm:$0xff] }
  0x36   :  { %1397 = vset.pattern.permute.xlu1 %v1447_v23  ;;  %459 = vmatpush.msra.mxu0 %v406_v20  ;;  %v414_v55 = vld [vmem:[%s2554_s7 + $0xb8] sm:$0xff]  ;;  %v431_v56 = vld [vmem:[%s2554_s7 + $0x140] sm:$0xff]  ;;  %v397_v57 = vld [vmem:[%s2554_s7 + $0x30] sm:$0xff] }
  0x37   :  { %1398 = vset.pattern.permute.xlu2 %v1447_v23  ;;  %499 = vmatpush.msra.mxu2 %v438_v26  ;;  %v447_v58 = vld [vmem:[%s2554_s7 + $0x1c0] sm:$0xff]  ;;  %v413_v59 = vld [vmem:[%s2554_s7 + $0xb0] sm:$0xff]  ;;  %v430_v60 = vld [vmem:[%s2554_s7 + $0x138] sm:$0xff] }
  0x38   :  { %460 = vmatpush.msra.mxu0 %v405_v22  ;;  %v396_v61 = vld [vmem:[%s2554_s7 + $0x28] sm:$0xff]  ;;  %v446_v62 = vld [vmem:[%s2554_s7 + $0x1b8] sm:$0xff]  ;;  %v429_v0 = vld [vmem:[%s2554_s7 + $0x130] sm:$0xff]  ;;  %1399 = vset.pattern.permute.xlu0 %v1447_v23 }
  0x39   :  { %500 = vmatpush.msra.mxu2 %v437_v32  ;;  %v412_v63 = vld [vmem:[%s2554_s7 + $0xa8] sm:$0xff]  ;;  %v395_v1 = vld [vmem:[%s2554_s7 + $0x20] sm:$0xff]  ;;  %v445_v2 = vld [vmem:[%s2554_s7 + $0x1b0] sm:$0xff] }
  0x3a   :  { %461 = vmatpush.msra.mxu0 %v404_v25  ;;  %v411_v3 = vld [vmem:[%s2554_s7 + $0xa0] sm:$0xff]  ;;  %v394_v8 = vld [vmem:[%s2554_s7 + $0x18] sm:$0xff]  ;;  %v409_v11 = vld [vmem:[%s2554_s7 + $0x90] sm:$0xff] }
  0x3b   :  { %501 = vmatpush.msra.mxu2 %v436_v36  ;;  %v428_v12 = vld [vmem:[%s2554_s7 + $0x128] sm:$0xff]  ;;  %v427_v16 = vld [vmem:[%s2554_s7 + $0x120] sm:$0xff]  ;;  %v426_v20 = vld [vmem:[%s2554_s7 + $0x118] sm:$0xff] }
  0x3c   :  { %462 = vmatpush.msra.mxu0 %v403_v31  ;;  %v444_v13 = vld [vmem:[%s2554_s7 + $0x1a8] sm:$0xff]  ;;  %v443_v17 = vld [vmem:[%s2554_s7 + $0x1a0] sm:$0xff]  ;;  %v425_v22 = vld [vmem:[%s2554_s7 + $0x110] sm:$0xff] }
  0x3d   :  { %502 = vmatpush.msra.mxu2 %v435_v40  ;;  %v392_v14 = vld [vmem:[%s2554_s7 + $0x8] sm:$0xff]  ;;  %v391_v18 = vld [vmem:[%s2554_s7] sm:$0xff]  ;;  %v441_v23 = vld [vmem:[%s2554_s7 + $0x190] sm:$0xff] }
  0x3e   :  { %463 = vmatpush.msra.mxu0 %v402_v37  ;;  %v407_v19 = vld [vmem:[%s2554_s7 + $0x80] sm:$0xff]  ;;  %v440_v25 = vld [vmem:[%s2554_s7 + $0x188] sm:$0xff]  ;;  %v1367_v31 = vld [vmem:[%s2555_s3 + $0x10] sm:$0xff] }
  0x3f   :  { %503 = vmatpush.msra.mxu2 %v434_v44  ;;  %v423_v26 = vld [vmem:[%s2554_s7 + $0x100] sm:$0xff] }
  0x40   :  { %464 = vmatpush.msra.mxu0 %v401_v41  ;;  %v539_v32 = vld [vmem:[%s2555_s3] sm:$0xff] }
  0x41   :  { %504 = vmatpush.msra.mxu2 %v433_v48  ;;  %v275_v41 = vld [vmem:[%s2556_s26] sm:$0xf] }
  0x42   :  { %465 = vmatpush.msra.mxu0 %v400_v45  ;;  %v282_v44 = vperm.slane %v275_v41, 0  ;;  %v283_v45 = vperm.slane %v275_v41, 1 }
  0x43   :  { %505 = vmatpush.msra.mxu2 %v432_v52 }
  0x44   :  { %466 = vmatpush.msra.mxu0 %v399_v49 }
  0x45   :  { %506 = vmatpush.msra.mxu2 %v431_v56  ;;  %v285_v56 = vperm.slane %v275_v41, 3 }
  0x46   :  { %467 = vmatpush.msra.mxu0 %v398_v53 }
  0x47   :  { %507 = vmatpush.msra.mxu2 %v430_v60 }
  0x48   :  { %468 = vmatpush.msra.mxu0 %v397_v57 }
  0x49   :  { %508 = vmatpush.msra.mxu2 %v429_v0 }
  0x4a   :  { %469 = vmatpush.msra.mxu0 %v396_v61 }
  0x4b   :  { %509 = vmatpush.msra.mxu2 %v428_v12  ;;  %v724_v12 = vld [vmem:[%s2521_s8 + $0x140] sm:$0x1f] }
  0x4c   :  { %470 = vmatpush.msra.mxu0 %v395_v1 }
  0x4d   :  { %510 = vmatpush.msra.mxu2 %v427_v16  ;;  %v727_v16 = vld [vmem:[%s2521_s8 + $0x158] sm:$0x1f] }
  0x4e   :  { %471 = vmatpush.msra.mxu0 %v394_v8  ;;  %v1371_v8 = vld [vmem:[%s2557_s27 + $0x10] sm:$0xff] }
  0x4f   :  { %511 = vmatpush.msra.mxu2 %v426_v20  ;;  %v716_v20 = vld [vmem:[%s2521_s8 + $0x100] sm:$0xff] }
  0x51   :  { %512 = vmatpush.msra.mxu2 %v425_v22  ;;  %v718_v22 = vld [vmem:[%s2521_s8 + $0x110] sm:$0xff] }
  0x96   :  { %v153_v15 = vpop.xlane.xlu0 %152 }
  0x9e   :  { %v224_v30 = vpop.xlane.xlu0 %223 }
  0x9f   :  { %v120_v9 = vpop.f32.mrf.mxu0  ;;  %v230_v34 = vsel %vm228_vm5, %v153_v15, %v224_v30  ;;  %v408_v15 = vld [vmem:[%s2554_s7 + $0x88] sm:$0xff] }
  0xa0   :  { %1346 = vmatmul.msk.f32.vlgmr.msra.gmra.mxu1 %vm77_vm2, %v120_v9  ;;  %278 = vperm.xlu1 %1397, %v230_v34   ;;  %v410_v9 = vld [vmem:[%s2554_s7 + $0x98] sm:$0xff]  ;;  %v540_v30 = vld [vmem:[%s2555_s3 + $0x8] sm:$0x3] }
  0xa1   :  { %479 = vmatpush.msra.mxu1 %v422_v21  ;;  %v442_v21 = vld [vmem:[%s2554_s7 + $0x198] sm:$0xff]  ;;  %v542_v36 = vsel %vm79_vm0, %v540_v30, 0.0 }
  0xa3   :  { %480 = vmatpush.msra.mxu1 %v421_v24  ;;  %v424_v24 = vld [vmem:[%s2554_s7 + $0x108] sm:$0xff] }
  0xa4   :  { %513 = vmatpush.msra.mxu2 %v424_v24  ;;  %v712_v24 = vld [vmem:[%s2521_s8 + $0xe0] sm:$0xff] }
  0xa5   :  { %v190_v10 = vpop.f32.mrf.mxu2  ;;  %481 = vmatpush.msra.mxu1 %v420_v27  ;;  %v439_v27 = vld [vmem:[%s2554_s7 + $0x180] sm:$0xff] }
  0xa6   :  { %1354 = vmatmul.msk.f32.vlgmr.msra.gmra.mxu3 %vm77_vm2, %v190_v10  ;;  %v393_v10 = vld [vmem:[%s2554_s7 + $0x10] sm:$0xff]  ;;  %514 = vmatpush.msra.mxu2 %v423_v26 }
  0xa7   :  { %519 = vmatpush.msra.mxu3 %v454_v28  ;;  %482 = vmatpush.msra.mxu1 %v419_v35  ;;  %v1368_v28 = vld [vmem:[%s2555_s3 + $0x18] sm:$0x3]  ;;  %v541_v35 = vsel %vm77_vm2, %v539_v32, 0.0  ;;  %v714_v26 = vld [vmem:[%s2521_s8 + $0xf0] sm:$0xff] }
  0xa8   :  { %472 = vmatpush.msra.mxu0 %v393_v10  ;;  %v612_v34 = vsel %vm79_vm0, %v1368_v28, 0.0 }
  0xa9   :  { %520 = vmatpush.msra.mxu3 %v453_v33  ;;  %483 = vmatpush.msra.mxu1 %v418_v39  ;;  %v611_v33 = vsel %vm77_vm2, %v1367_v31, 0.0 }
  0xaa   :  { %473 = vmatpush.msra.mxu0 %v392_v14  ;;  %v613_v37 = vadd.f32 %v612_v34, %v611_v33  ;;  %v725_v14 = vld [vmem:[%s2521_s8 + $0x148] sm:$0x1f]  ;;  %v704_v33 = vld [vmem:[%s2521_s8 + $0xa0] sm:$0xff] }
  0xab   :  { %521 = vmatpush.msra.mxu3 %v452_v38  ;;  %484 = vmatpush.msra.mxu1 %v417_v43  ;;  %v543_v38 = vadd.f32 %v542_v36, %v541_v35  ;;  %v705_v34 = vld [vmem:[%s2521_s8 + $0xa8] sm:$0xff]  ;;  %v706_v35 = vld [vmem:[%s2521_s8 + $0xb0] sm:$0xff]  ;;  %v707_v36 = vld [vmem:[%s2521_s8 + $0xb8] sm:$0xff] }
  0xac   :  { %474 = vmatpush.msra.mxu0 %v391_v18  ;;  %v614_v39 = vrot.slane %v613_v37, 4  ;;  %v722_v18 = vld [vmem:[%s2521_s8 + $0x130] sm:$0xff] }
  0xad   :  { %522 = vmatpush.msra.mxu3 %v451_v42  ;;  %485 = vmatpush.msra.mxu1 %v416_v47  ;;  %v544_v40 = vrot.slane %v543_v38, 4 }
  0xae   :  { %v615_v42 = vadd.f32 %v614_v39, %v613_v37  ;;  %v700_v37 = vld [vmem:[%s2521_s8 + $0x80] sm:$0xff]  ;;  %v702_v39 = vld [vmem:[%s2521_s8 + $0x90] sm:$0xff] }
  0xaf   :  { %523 = vmatpush.msra.mxu3 %v450_v46  ;;  %486 = vmatpush.msra.mxu1 %v415_v51  ;;  %v545_v43 = vadd.f32 %v544_v40, %v543_v38  ;;  %v701_v38 = vld [vmem:[%s2521_s8 + $0x88] sm:$0xff]  ;;  %v703_v40 = vld [vmem:[%s2521_s8 + $0x98] sm:$0xff] }
  0xb0   :  { %v616_v47 = vrot.slane %v615_v42, 2 }
  0xb1   :  { %524 = vmatpush.msra.mxu3 %v449_v50  ;;  %487 = vmatpush.msra.mxu1 %v414_v55  ;;  %v546_v48 = vrot.slane %v545_v43, 2  ;;  %v284_v55 = vperm.slane %v275_v41, 2  ;;  %v696_v41 = vld [vmem:[%s2521_s8 + $0x60] sm:$0xff] }
  0xb2   :  { %v617_v57 = vadd.f32 %v616_v47, %v615_v42  ;;  %v1400_v42 = vld [vmem:[%s2558_s30] ss:$0 sm:$0xff] }
  0xb3   :  { %525 = vmatpush.msra.mxu3 %v448_v54  ;;  %488 = vmatpush.msra.mxu1 %v413_v59  ;;  %v692_v47 = vld [vmem:[%s2521_s8 + $0x40] sm:$0xff] }
  0xb4   :  { %v618_v61 = vrot.slane %v617_v57, 1 }
  0xb5   :  { %526 = vmatpush.msra.mxu3 %v447_v58  ;;  %489 = vmatpush.msra.mxu1 %v412_v63  ;;  %v547_v58 = vadd.f32 %v546_v48, %v545_v43  ;;  %v697_v43 = vld [vmem:[%s2521_s8 + $0x68] sm:$0xff] }
  0xb6   :  { %v693_v48 = vld [vmem:[%s2521_s8 + $0x48] sm:$0xff] }
  0xb7   :  { %527 = vmatpush.msra.mxu3 %v446_v62  ;;  %490 = vmatpush.msra.mxu1 %v411_v3  ;;  %v548_v62 = vrot.slane %v547_v58, 1  ;;  %v619_v3 = vadd.f32 %v618_v61, %v617_v57  ;;  %v689_v61 = vld [vmem:[%s2521_s8 + $0x28] sm:$0xff] }
  0xb9   :  { %528 = vmatpush.msra.mxu3 %v445_v2  ;;  %491 = vmatpush.msra.mxu1 %v410_v9  ;;  %v578_v9 = vld [vmem:[%s2557_s27 + $0x8] sm:$0x3] }
  0xbb   :  { %529 = vmatpush.msra.mxu3 %v444_v13  ;;  %492 = vmatpush.msra.mxu1 %v409_v11  ;;  %v720_v13 = vld [vmem:[%s2521_s8 + $0x120] sm:$0xff] }
  0xbd   :  { %493 = vmatpush.msra.mxu1 %v408_v15  ;;  %530 = vmatpush.msra.mxu3 %v443_v17  ;;  %v726_v15 = vld [vmem:[%s2521_s8 + $0x150] sm:$0x1f]  ;;  %v721_v17 = vld [vmem:[%s2521_s8 + $0x128] sm:$0xff] }
  0xbf   :  { %494 = vmatpush.msra.mxu1 %v407_v19  ;;  %531 = vmatpush.msra.mxu3 %v442_v21  ;;  %v723_v19 = vld [vmem:[%s2521_s8 + $0x138] sm:$0xff]  ;;  %v717_v21 = vld [vmem:[%s2521_s8 + $0x108] sm:$0xff] }
  0xc1   :  { %532 = vmatpush.msra.mxu3 %v441_v23  ;;  %v719_v23 = vld [vmem:[%s2521_s8 + $0x118] sm:$0xff] }
  0xc3   :  { %533 = vmatpush.msra.mxu3 %v440_v25  ;;  %v713_v25 = vld [vmem:[%s2521_s8 + $0xe8] sm:$0xff] }
  0xc5   :  { %534 = vmatpush.msra.mxu3 %v439_v27  ;;  %v715_v27 = vld [vmem:[%s2521_s8 + $0xf8] sm:$0xff] }
 0x112   :  { %v279_v46 = vpop.permute.xlu1 %278 }
 0x113   :  { %v290_v49 = vmul.f32 %v282_v44, %v279_v46  ;;  %v291_v50 = vmul.f32 %v283_v45, %v279_v46  ;;  %v292_v59 = vmul.f32 %v284_v55, %v279_v46  ;;  %v293_v60 = vmul.f32 %v285_v56, %v279_v46  ;;  %v698_v44 = vld [vmem:[%s2521_s8 + $0x70] sm:$0xff]  ;;  %v699_v46 = vld [vmem:[%s2521_s8 + $0x78] sm:$0xff] }
 0x11d   :  { %v148_v5 = vpop.f32.mrf.mxu1 }
 0x129   :  { %v219_v4 = vpop.f32.mrf.mxu3 }
 0x12a   :  { %v226_v6 = vrot.slane %v219_v4, 7  ;;  %v549_v4 = vadd.f32 %v548_v62, %v547_v58  ;;  %v690_v62 = vld [vmem:[%s2521_s8 + $0x30] sm:$0xff] }
 0x12c   :  { %v229_v7 = vsel %vm228_vm5, %v148_v5, %v226_v6  ;;  %v620_v5 = vmul.f32 %v619_v3, %v1594_v29  ;;  %v550_v6 = vmul.f32 %v549_v4, %v1594_v29  ;;  %v577_v29 = vld [vmem:[%s2557_s27] sm:$0xff]  ;;  %v687_v3 = vld [vmem:[%s2521_s8 + $0x18] sm:$0xff] }
 0x12d   :  { %1356 = vmatmul.msk.f32.vlgmr.msrb.gmra.mxu0 %vm294_vm6, %v229_v7  ;;  %1358 = vmatmul.msk.f32.vlgmr.msrb.gmra.mxu1 %vm294_vm6, %v229_v7 }
 0x12e   :  { %1360 = vmatmul.msk.f32.vlgmr.msrb.gmra.mxu2 %vm294_vm6, %v229_v7  ;;  %1362 = vmatmul.msk.f32.vlgmr.msrb.gmra.mxu3 %vm294_vm6, %v229_v7  ;;  %v1372_v7 = vld [vmem:[%s2557_s27 + $0x18] sm:$0x3]  ;;  %v676_v10 = vsel %vm77_vm2, %v620_v5, 0.0  ;;  %v605_v11 = vsel %vm77_vm2, %v550_v6, 0.0 }
 0x12f   :  { %1369 = vmatpush.msk.msrb.mxu2 %vm99_vm1, %v1368_v28  ;;  %1363 = vmatpush.msk.msrb.mxu3 %vm99_vm1, %v540_v30  ;;  %v708_v28 = vld [vmem:[%s2521_s8 + $0xc0] sm:$0xff]  ;;  %v709_v30 = vld [vmem:[%s2521_s8 + $0xc8] sm:$0xff] }
 0x130   :  { %1365 = vmatpush.msk.msrb.mxu1 %vm99_vm1, %v578_v9  ;;  %677 = vadd.xlane.f32.xlu2 %v676_v10  ;;  %v855_v10 = vld [vmem:[%s2523_s10 + $0x68] sm:$0xff] }
 0x131   :  { %642 = vmatpush.msrb.mxu2 %v1367_v31  ;;  %572 = vmatpush.msrb.mxu3 %v539_v32  ;;  %v710_v31 = vld [vmem:[%s2521_s8 + $0xd0] sm:$0xff]  ;;  %v711_v32 = vld [vmem:[%s2521_s8 + $0xd8] sm:$0xff] }
 0x132   :  { %606 = vadd.xlane.f32.xlu1 %v605_v11  ;;  %600 = vmatpush.msrb.mxu1 %v577_v29  ;;  %v872_v29 = vld [vmem:[%s2523_s10 + $0xf0] sm:$0xff]  ;;  %v871_v11 = vld [vmem:[%s2523_s10 + $0xe8] sm:$0xff] }
 0x133   :  { %1375 = vmatpush.msk.msrb.mxu0 %vm298_vm4, %v724_v12  ;;  %v889_v12 = vld [vmem:[%s2523_s10 + $0x178] sm:$0xff] }
 0x135   :  { %768 = vmatpush.msrb.mxu0 %v720_v13  ;;  %v854_v13 = vld [vmem:[%s2523_s10 + $0x60] sm:$0xff] }
 0x137   :  { %769 = vmatpush.msrb.mxu0 %v716_v20  ;;  %v853_v20 = vld [vmem:[%s2523_s10 + $0x58] sm:$0xff] }
 0x139   :  { %770 = vmatpush.msrb.mxu0 %v712_v24  ;;  %v852_v24 = vld [vmem:[%s2523_s10 + $0x50] sm:$0xff] }
 0x13b   :  { %771 = vmatpush.msrb.mxu0 %v708_v28  ;;  %v851_v28 = vld [vmem:[%s2523_s10 + $0x48] sm:$0xff] }
 0x13d   :  { %772 = vmatpush.msrb.mxu0 %v704_v33  ;;  %v850_v33 = vld [vmem:[%s2523_s10 + $0x40] sm:$0xff] }
 0x13f   :  { %773 = vmatpush.msrb.mxu0 %v700_v37  ;;  %v849_v37 = vld [vmem:[%s2523_s10 + $0x38] sm:$0xff] }
 0x141   :  { %774 = vmatpush.msrb.mxu0 %v696_v41  ;;  %v848_v41 = vld [vmem:[%s2523_s10 + $0x30] sm:$0xff] }
 0x143   :  { %775 = vmatpush.msrb.mxu0 %v692_v47  ;;  %v880_v47 = vld [vmem:[%s2523_s10 + $0x130] sm:$0xff] }
 0x1a3   :  { %v678_v4 = vpop.xlane.xlu2 %677 }
 0x1aa   :  { %v328_v51 = vpop.f32.mrf.mxu0  ;;  %v348_v52 = vpop.f32.mrf.mxu1 }
 0x1ab   :  { %v329_v53 = vadd.f32 %v328_v51, %v290_v49  ;;  %v349_v54 = vadd.f32 %v348_v52, %v291_v50  ;;  %v694_v49 = vld [vmem:[%s2521_s8 + $0x50] sm:$0xff]  ;;  %v695_v50 = vld [vmem:[%s2521_s8 + $0x58] sm:$0xff] }
 0x1ad   :  { %475 = vmatmul.f32.vlgmr.msra.gmra.mxu0 %v329_v53  ;;  %495 = vmatmul.f32.vlgmr.msra.gmra.mxu1 %v349_v54 }
 0x1ae   :  { %1377 = vmatpush.msk.msra.mxu1 %vm298_vm4, %v725_v14  ;;  %v905_v14 = vld [vmem:[%s2523_s10 + $0x1f8] sm:$0xff] }
 0x1b0   :  { %788 = vmatpush.msra.mxu1 %v721_v17  ;;  %v904_v17 = vld [vmem:[%s2523_s10 + $0x1f0] sm:$0xff] }
 0x1b1   :  { %v368_v63 = vpop.f32.mrf.mxu2  ;;  %v388_v0 = vpop.f32.mrf.mxu3 }
 0x1b2   :  { %v369_v1 = vadd.f32 %v368_v63, %v292_v59  ;;  %v389_v2 = vadd.f32 %v388_v0, %v293_v60  ;;  %789 = vmatpush.msra.mxu1 %v717_v21  ;;  %v688_v60 = vld [vmem:[%s2521_s8 + $0x20] sm:$0xff]  ;;  %v691_v63 = vld [vmem:[%s2521_s8 + $0x38] sm:$0xff] }
 0x1b3   :  { %776 = vmatpush.msrb.mxu0 %v688_v60  ;;  %v684_v0 = vld [vmem:[%s2521_s8] sm:$0xff]  ;;  %v869_v21 = vld [vmem:[%s2523_s10 + $0xd8] sm:$0xff]  ;;  %v879_v60 = vld [vmem:[%s2523_s10 + $0x128] sm:$0xff] }
 0x1b4   :  { %515 = vmatmul.f32.vlgmr.msra.gmra.mxu2 %v369_v1  ;;  %535 = vmatmul.f32.vlgmr.msra.gmra.mxu3 %v389_v2  ;;  %v685_v1 = vld [vmem:[%s2521_s8 + $0x8] sm:$0xff]  ;;  %v686_v2 = vld [vmem:[%s2521_s8 + $0x10] sm:$0xff] }
 0x1b5   :  { %1373 = vmatpush.msk.msra.mxu3 %vm99_vm1, %v1372_v7  ;;  %1379 = vmatpush.msk.msra.mxu2 %vm298_vm4, %v726_v15  ;;  %v873_v7 = vld [vmem:[%s2523_s10 + $0xf8] sm:$0xff]  ;;  %v870_v15 = vld [vmem:[%s2523_s10 + $0xe0] sm:$0xff] }
 0x1b6   :  { %790 = vmatpush.msra.mxu1 %v713_v25  ;;  %777 = vmatpush.msrb.mxu0 %v684_v0  ;;  %v868_v25 = vld [vmem:[%s2523_s10 + $0xd0] sm:$0xff]  ;;  %v878_v0 = vld [vmem:[%s2523_s10 + $0x120] sm:$0xff] }
 0x1b7   :  { %671 = vmatpush.msra.mxu3 %v1371_v8  ;;  %808 = vmatpush.msra.mxu2 %v722_v18  ;;  %v856_v8 = vld [vmem:[%s2523_s10 + $0x70] sm:$0xff]  ;;  %v887_v18 = vld [vmem:[%s2523_s10 + $0x168] sm:$0xff] }
 0x1b8   :  { %791 = vmatpush.msra.mxu1 %v709_v30  ;;  %v867_v30 = vld [vmem:[%s2523_s10 + $0xc8] sm:$0xff] }
 0x1b9   :  { %809 = vmatpush.msra.mxu2 %v718_v22  ;;  %v886_v22 = vld [vmem:[%s2523_s10 + $0x160] sm:$0xff] }
 0x1ba   :  { %792 = vmatpush.msra.mxu1 %v705_v34  ;;  %v866_v34 = vld [vmem:[%s2523_s10 + $0xc0] sm:$0xff] }
 0x1bb   :  { %810 = vmatpush.msra.mxu2 %v714_v26  ;;  %v885_v26 = vld [vmem:[%s2523_s10 + $0x158] sm:$0xff] }
 0x1bc   :  { %1370 = vmatmul.msk.f32.vlgmr.msrb.gmra.mxu2 %vm77_vm2, %v620_v5  ;;  %1364 = vmatmul.msk.f32.vlgmr.msrb.gmra.mxu3 %vm77_vm2, %v550_v6  ;;  %v607_v5 = vpop.xlane.xlu1 %606  ;;  %v857_v6 = vld [vmem:[%s2523_s10 + $0x78] sm:$0xff] }
 0x1bd   :  { %1381 = vmatpush.msk.msrb.mxu3 %vm298_vm4, %v727_v16  ;;  %811 = vmatpush.msra.mxu2 %v710_v31  ;;  %v683_v9 = vsel %vm228_vm5, %v607_v5, %v678_v4  ;;  %v888_v16 = vld [vmem:[%s2523_s10 + $0x170] sm:$0xff]  ;;  %v877_v4 = vld [vmem:[%s2523_s10 + $0x118] sm:$0xff]  ;;  %vm1322_vm4 = vcmask 254976  }
 0x1be   :  { %793 = vmatpush.msra.mxu1 %v701_v38  ;;  %910 = vmatpush.msra.mxu0 %v857_v6  ;;  %v884_v31 = vld [vmem:[%s2523_s10 + $0x150] sm:$0xff]  ;;  %v865_v38 = vld [vmem:[%s2523_s10 + $0xb8] sm:$0xff] }
 0x1bf   :  { %828 = vmatpush.msrb.mxu3 %v723_v19  ;;  %812 = vmatpush.msra.mxu2 %v706_v35  ;;  %v903_v19 = vld [vmem:[%s2523_s10 + $0x1e8] sm:$0xff]  ;;  %v893_v5 = vld [vmem:[%s2523_s10 + $0x198] sm:$0xff]  ;;  %v876_v6 = vld [vmem:[%s2523_s10 + $0x110] sm:$0xff] }
 0x1c0   :  { %794 = vmatpush.msra.mxu1 %v697_v43  ;;  %731 = vperm.xlu2 %1398, %v683_v9   ;;  %v883_v35 = vld [vmem:[%s2523_s10 + $0x148] sm:$0xff]  ;;  %v881_v43 = vld [vmem:[%s2523_s10 + $0x138] sm:$0xff] }
 0x1c1   :  { %829 = vmatpush.msrb.mxu3 %v719_v23  ;;  %813 = vmatpush.msra.mxu2 %v702_v39  ;;  %v902_v23 = vld [vmem:[%s2523_s10 + $0x1e0] sm:$0xff]  ;;  %v891_v9 = vld [vmem:[%s2523_s10 + $0x188] sm:$0xff] }
 0x1c2   :  { %795 = vmatpush.msra.mxu1 %v693_v48  ;;  %911 = vmatpush.msra.mxu0 %v856_v8  ;;  %v882_v39 = vld [vmem:[%s2523_s10 + $0x140] sm:$0xff]  ;;  %v896_v48 = vld [vmem:[%s2523_s10 + $0x1b0] sm:$0xff]  ;;  %v875_v8 = vld [vmem:[%s2523_s10 + $0x108] sm:$0xff] }
 0x1c3   :  { %830 = vmatpush.msrb.mxu3 %v715_v27  ;;  %814 = vmatpush.msra.mxu2 %v698_v44  ;;  %v901_v27 = vld [vmem:[%s2523_s10 + $0x1d8] sm:$0xff] }
 0x1c4   :  { %796 = vmatpush.msra.mxu1 %v689_v61  ;;  %912 = vmatpush.msra.mxu0 %v855_v10  ;;  %v897_v44 = vld [vmem:[%s2523_s10 + $0x1b8] sm:$0xff]  ;;  %v895_v61 = vld [vmem:[%s2523_s10 + $0x1a8] sm:$0xff]  ;;  %v890_v10 = vld [vmem:[%s2523_s10 + $0x180] sm:$0xff] }
 0x1c5   :  { %831 = vmatpush.msrb.mxu3 %v711_v32  ;;  %815 = vmatpush.msra.mxu2 %v694_v49  ;;  %v900_v32 = vld [vmem:[%s2523_s10 + $0x1d0] sm:$0xff]  ;;  %v846_v49 = vld [vmem:[%s2523_s10 + $0x20] sm:$0xff] }
 0x1c6   :  { %797 = vmatpush.msra.mxu1 %v685_v1  ;;  %913 = vmatpush.msra.mxu0 %v854_v13  ;;  %v894_v1 = vld [vmem:[%s2523_s10 + $0x1a0] sm:$0xff] }
 0x1c7   :  { %832 = vmatpush.msrb.mxu3 %v707_v36  ;;  %816 = vmatpush.msra.mxu2 %v690_v62  ;;  %v899_v36 = vld [vmem:[%s2523_s10 + $0x1c8] sm:$0xff] }
 0x1c8   :  { %914 = vmatpush.msra.mxu0 %v853_v20  ;;  %v843_v62 = vld [vmem:[%s2523_s10 + $0x8] sm:$0xff] }
 0x1c9   :  { %833 = vmatpush.msrb.mxu3 %v703_v40  ;;  %817 = vmatpush.msra.mxu2 %v686_v2  ;;  %v898_v40 = vld [vmem:[%s2523_s10 + $0x1c0] sm:$0xff] }
 0x1ca   :  { %915 = vmatpush.msra.mxu0 %v852_v24  ;;  %v842_v2 = vld [vmem:[%s2523_s10] sm:$0xff] }
 0x1cb   :  { %834 = vmatpush.msrb.mxu3 %v699_v46  ;;  %950 = vmatpush.msrb.mxu2 %v889_v12  ;;  %v863_v46 = vld [vmem:[%s2523_s10 + $0xa8] sm:$0xff] }
 0x1cc   :  { %916 = vmatpush.msra.mxu0 %v851_v28 }
 0x1cd   :  { %835 = vmatpush.msrb.mxu3 %v695_v50  ;;  %951 = vmatpush.msrb.mxu2 %v888_v16  ;;  %v862_v50 = vld [vmem:[%s2523_s10 + $0xa0] sm:$0xff] }
 0x1ce   :  { %917 = vmatpush.msra.mxu0 %v850_v33 }
 0x1cf   :  { %836 = vmatpush.msrb.mxu3 %v691_v63  ;;  %952 = vmatpush.msrb.mxu2 %v887_v18  ;;  %v859_v63 = vld [vmem:[%s2523_s10 + $0x88] sm:$0xff] }
 0x1d0   :  { %918 = vmatpush.msra.mxu0 %v849_v37 }
 0x1d1   :  { %837 = vmatpush.msrb.mxu3 %v687_v3  ;;  %953 = vmatpush.msrb.mxu2 %v886_v22  ;;  %v858_v3 = vld [vmem:[%s2523_s10 + $0x80] sm:$0xff] }
 0x1d2   :  { %919 = vmatpush.msra.mxu0 %v848_v41  ;;  %v1448_v41 = vmov 64.0  }
 0x1d3   :  { %954 = vmatpush.msrb.mxu2 %v885_v26  ;;  %1410 = vrcp.f32 %v1448_v41 }
 0x1d5   :  { %955 = vmatpush.msrb.mxu2 %v884_v31 }
 0x1d7   :  { %956 = vmatpush.msrb.mxu2 %v883_v35 }
 0x1d9   :  { %957 = vmatpush.msrb.mxu2 %v882_v39 }
 0x1db   :  { %958 = vmatpush.msrb.mxu2 %v881_v43 }
 0x1dd   :  { %959 = vmatpush.msrb.mxu2 %v880_v47 }
 0x1df   :  { %960 = vmatpush.msrb.mxu2 %v879_v60  ;;  %v1060_v60 = vld [vmem:[%s2527_s14 + $0x30] sm:$0xff] }
 0x1e1   :  { %961 = vmatpush.msrb.mxu2 %v878_v0  ;;  %v1055_v0 = vld [vmem:[%s2527_s14 + $0x8] sm:$0xff] }
 0x1e3   :  { %962 = vmatpush.msrb.mxu2 %v877_v4 }
 0x1e5   :  { %963 = vmatpush.msrb.mxu2 %v876_v6  ;;  %v1096_v6 = vld [vmem:[%s2529_s16 + $0x30] sm:$0xff] }
 0x1e7   :  { %964 = vmatpush.msrb.mxu2 %v875_v8 }
 0x22a   :  { %v476_v45 = vpop.f32.mrf.mxu0  ;;  %v496_v52 = vpop.f32.mrf.mxu1 }
 0x22b   :  { %v477_v51 = vadd.f32 %v1400_v42, %v476_v45  ;;  %v864_v42 = vld [vmem:[%s2523_s10 + $0xb0] sm:$0xff]  ;;  %v847_v45 = vld [vmem:[%s2523_s10 + $0x28] sm:$0xff] }
 0x22c   :  { %920 = vmatpush.msra.mxu0 %v847_v45 }
 0x22d   :  { %v497_v53 = vadd.f32 %v496_v52, %v477_v51  ;;  %v845_v51 = vld [vmem:[%s2523_s10 + $0x18] sm:$0xff] }
 0x22e   :  { %v861_v52 = vld [vmem:[%s2523_s10 + $0x98] sm:$0xff]  ;;  %921 = vmatpush.msra.mxu0 %v846_v49 }
 0x230   :  { %922 = vmatpush.msra.mxu0 %v845_v51 }
 0x237   :  { %v516_v54 = vpop.f32.mrf.mxu2  ;;  %v536_v55 = vpop.f32.mrf.mxu3 }
 0x238   :  { %v517_v56 = vadd.f32 %v516_v54, %v497_v53 }
 0x23a   :  { %v2107_v57 = vadd.f32 %v536_v55, %v517_v56 }
 0x23f   :  { %v644_v58 = vpop.f32.mrf.mxu2  ;;  %v574_v59 = vpop.f32.mrf.mxu3 }
 0x240   :  { %1374 = vmatmul.msk.f32.vlgmr.msra.gmra.mxu3 %vm77_vm2, %v644_v58  ;;  %1366 = vmatmul.msk.f32.vlgmr.msrb.gmra.mxu1 %vm77_vm2, %v574_v59  ;;  %v844_v58 = vld [vmem:[%s2523_s10 + $0x10] sm:$0xff] }
 0x241   :  { %930 = vmatpush.msrb.mxu1 %v873_v7  ;;  %970 = vmatpush.msra.mxu3 %v905_v14  ;;  %v860_v59 = vld [vmem:[%s2523_s10 + $0x90] sm:$0xff]  ;;  %v732_v14 = vpop.permute.xlu2 %731 }
 0x242   :  { %923 = vmatpush.msra.mxu0 %v844_v58  ;;  %v892_v7 = vld [vmem:[%s2523_s10 + $0x190] sm:$0xff] }
 0x243   :  { %931 = vmatpush.msrb.mxu1 %v872_v29  ;;  %971 = vmatpush.msra.mxu3 %v904_v17  ;;  %v874_v29 = vld [vmem:[%s2523_s10 + $0x100] sm:$0xff] }
 0x244   :  { %924 = vmatpush.msra.mxu0 %v843_v62  ;;  %965 = vmatpush.msrb.mxu2 %v874_v29  ;;  %v1057_v62 = vld [vmem:[%s2527_s14 + $0x18] sm:$0xff]  ;;  %v1094_v29 = vld [vmem:[%s2529_s16 + $0x20] sm:$0xff] }
 0x245   :  { %932 = vmatpush.msrb.mxu1 %v871_v11  ;;  %972 = vmatpush.msra.mxu3 %v903_v19  ;;  %v728_v11 = vld [vmem:[%s2522_s9] sm:$0xf]  ;;  %s1449_s9 = smov [#allocation2]  }
 0x246   :  { %925 = vmatpush.msra.mxu0 %v842_v2  ;;  %v735_v12 = vperm.slane %v728_v11, 0  ;;  %v736_v13 = vperm.slane %v728_v11, 1  ;;  %v737_v19 = vperm.slane %v728_v11, 2  ;;  %v738_v20 = vperm.slane %v728_v11, 3 }
 0x247   :  { %933 = vmatpush.msrb.mxu1 %v870_v15  ;;  %973 = vmatpush.msra.mxu3 %v902_v23 }
 0x248   :  { %v743_v15 = vmul.f32 %v735_v12, %v732_v14  ;;  %v744_v16 = vmul.f32 %v736_v13, %v732_v14  ;;  %v745_v23 = vmul.f32 %v737_v19, %v732_v14  ;;  %v746_v24 = vmul.f32 %v738_v20, %v732_v14  ;;  %v1093_v12 = vld [vmem:[%s2529_s16 + $0x18] sm:$0xff]  ;;  %v1092_v14 = vld [vmem:[%s2529_s16 + $0x10] sm:$0xff] }
 0x249   :  { %934 = vmatpush.msrb.mxu1 %v869_v21  ;;  %974 = vmatpush.msra.mxu3 %v901_v27 }
 0x24b   :  { %935 = vmatpush.msrb.mxu1 %v868_v25  ;;  %975 = vmatpush.msra.mxu3 %v900_v32 }
 0x24d   :  { %936 = vmatpush.msrb.mxu1 %v867_v30  ;;  %976 = vmatpush.msra.mxu3 %v899_v36  ;;  %v1401_v30 = vld [vmem:[%s2524_s11] ss:$0 sm:$0xff] }
 0x24f   :  { %937 = vmatpush.msrb.mxu1 %v866_v34  ;;  %977 = vmatpush.msra.mxu3 %v898_v40  ;;  %v991_v40 = vsel %vm990_vm7, %v2107_v57, 0.0 }
 0x251   :  { %938 = vmatpush.msrb.mxu1 %v865_v38  ;;  %978 = vmatpush.msra.mxu3 %v897_v44 }
 0x253   :  { %939 = vmatpush.msrb.mxu1 %v864_v42  ;;  %979 = vmatpush.msra.mxu3 %v896_v48  ;;  %v1411_v42 = vpop.eup %1410 }
 0x254   :  { %v995_v43 = vmul.f32 64.0, %v1411_v42  ;;  %vm999_vm8 = vweird.f32 %v1411_v42 }
 0x255   :  { %940 = vmatpush.msrb.mxu1 %v863_v46  ;;  %980 = vmatpush.msra.mxu3 %v895_v61  ;;  %v1058_v61 = vld [vmem:[%s2527_s14 + $0x20] sm:$0xff] }
 0x256   :  { %v996_v44 = vsub.f32 1.0, %v995_v43  ;;  %v1202_v43 = vld [vmem:[%s2532_s19 + $0x38] sm:$0xff] }
 0x257   :  { %941 = vmatpush.msrb.mxu1 %v862_v50  ;;  %981 = vmatpush.msra.mxu3 %v894_v1  ;;  %v1054_v1 = vld [vmem:[%s2527_s14] sm:$0xff] }
 0x258   :  { %v997_v45 = vmul.f32 %v1411_v42, %v996_v44  ;;  %v1201_v44 = vld [vmem:[%s2532_s19 + $0x30] sm:$0xff] }
 0x259   :  { %942 = vmatpush.msrb.mxu1 %v861_v52  ;;  %982 = vmatpush.msra.mxu3 %v893_v5  ;;  %v1097_v5 = vld [vmem:[%s2529_s16 + $0x38] sm:$0xff] }
 0x25a   :  { %v998_v46 = vadd.f32 %v1411_v42, %v997_v45  ;;  %v1200_v45 = vld [vmem:[%s2532_s19 + $0x28] sm:$0xff] }
 0x25b   :  { %943 = vmatpush.msrb.mxu1 %v860_v59  ;;  %983 = vmatpush.msra.mxu3 %v892_v7  ;;  %v1061_v59 = vld [vmem:[%s2527_s14 + $0x38] sm:$0xff]  ;;  %v1095_v7 = vld [vmem:[%s2529_s16 + $0x28] sm:$0xff] }
 0x25c   :  { %v1000_v47 = vsel %vm999_vm8, %v1411_v42, %v998_v46  ;;  %v1199_v46 = vld [vmem:[%s2532_s19 + $0x20] sm:$0xff] }
 0x25d   :  { %944 = vmatpush.msrb.mxu1 %v859_v63  ;;  %984 = vmatpush.msra.mxu3 %v891_v9  ;;  %v1056_v63 = vld [vmem:[%s2527_s14 + $0x10] sm:$0xff] }
 0x25f   :  { %945 = vmatpush.msrb.mxu1 %v858_v3  ;;  %985 = vmatpush.msra.mxu3 %v890_v10 }
 0x2bd   :  { %v602_v54 = vpop.f32.mrf.mxu1 }
 0x2c3   :  { %v673_v53 = vpop.f32.mrf.mxu3 }
 0x2c4   :  { %v680_v55 = vrot.slane %v673_v53, 7 }
 0x2c6   :  { %v682_v56 = vsel %vm228_vm5, %v602_v54, %v680_v55 }
 0x2c7   :  { %1376 = vmatmul.msk.f32.vlgmr.msrb.gmra.mxu0 %vm294_vm6, %v682_v56  ;;  %1378 = vmatmul.msk.f32.vlgmr.msra.gmra.mxu1 %vm294_vm6, %v682_v56 }
 0x2c8   :  { %1380 = vmatmul.msk.f32.vlgmr.msra.gmra.mxu2 %vm294_vm6, %v682_v56  ;;  %1382 = vmatmul.msk.f32.vlgmr.msrb.gmra.mxu3 %vm294_vm6, %v682_v56 }
 0x2c9   :  { %1136 = vmatpush.msra.mxu2 %v1061_v59  ;;  %1078 = vmatpush.msrb.mxu0 %v1061_v59  ;;  %v1187_v59 = vld [vmem:[%s2531_s18] sm:$0xff] }
 0x2ca   :  { %1159 = vmatpush.msrb.mxu3 %v1097_v5  ;;  %1113 = vmatpush.msra.mxu1 %v1097_v5 }
 0x2cb   :  { %1137 = vmatpush.msra.mxu2 %v1060_v60  ;;  %1079 = vmatpush.msrb.mxu0 %v1060_v60  ;;  %v1405_v60 = vld [vmem:[%s2530_s17] ss:$0 sm:$0xff] }
 0x2cc   :  { %1160 = vmatpush.msrb.mxu3 %v1096_v6  ;;  %1114 = vmatpush.msra.mxu1 %v1096_v6 }
 0x2ce   :  { %1161 = vmatpush.msrb.mxu3 %v1095_v7  ;;  %1115 = vmatpush.msra.mxu1 %v1095_v7 }
 0x2d0   :  { %1162 = vmatpush.msrb.mxu3 %v1094_v29  ;;  %1116 = vmatpush.msra.mxu1 %v1094_v29 }
 0x2d2   :  { %1163 = vmatpush.msrb.mxu3 %v1093_v12  ;;  %1117 = vmatpush.msra.mxu1 %v1093_v12  ;;  %v1290_v12 = vld [vmem:[%s2534_s21 + $0x30] sm:$0xff] }
 0x2d4   :  { %1164 = vmatpush.msrb.mxu3 %v1092_v14  ;;  %1118 = vmatpush.msra.mxu1 %v1092_v14  ;;  %v1288_v14 = vld [vmem:[%s2534_s21 + $0x20] sm:$0xff] }
 0x344   :  { %v779_v17 = vpop.f32.mrf.mxu0  ;;  %v799_v18 = vpop.f32.mrf.mxu1 }
 0x345   :  { %v780_v21 = vadd.f32 %v779_v17, %v743_v15  ;;  %v800_v22 = vadd.f32 %v799_v18, %v744_v16 }
 0x347   :  { %926 = vmatmul.f32.vlgmr.msra.gmra.mxu0 %v780_v21  ;;  %946 = vmatmul.f32.vlgmr.msrb.gmra.mxu1 %v800_v22  ;;  %v1402_v21 = vld [vmem:[%s2525_s12] ss:$0 sm:$0xff] }
 0x34b   :  { %v819_v25 = vpop.f32.mrf.mxu2  ;;  %v839_v26 = vpop.f32.mrf.mxu3 }
 0x34c   :  { %v820_v27 = vadd.f32 %v819_v25, %v745_v23  ;;  %v840_v28 = vadd.f32 %v839_v26, %v746_v24  ;;  %v1403_v25 = vld [vmem:[%s2526_s13] ss:$0 sm:$0xff] }
 0x34e   :  { %966 = vmatmul.f32.vlgmr.msrb.gmra.mxu2 %v820_v27  ;;  %986 = vmatmul.f32.vlgmr.msra.gmra.mxu3 %v840_v28 }
 0x3c4   :  { %v927_v31 = vpop.f32.mrf.mxu0  ;;  %v947_v33 = vpop.f32.mrf.mxu1 }
 0x3c5   :  { %v928_v32 = vadd.f32 %v1401_v30, %v927_v31 }
 0x3c7   :  { %v948_v34 = vadd.f32 %v947_v33, %v928_v32 }
 0x3d1   :  { %v967_v35 = vpop.f32.mrf.mxu2  ;;  %v987_v37 = vpop.f32.mrf.mxu3 }
 0x3d2   :  { %v968_v36 = vadd.f32 %v967_v35, %v948_v34 }
 0x3d4   :  { %v988_v38 = vadd.f32 %v987_v37, %v968_v36  ;;  %v1091_v36 = vld [vmem:[%s2529_s16 + $0x8] sm:$0xff]  ;;  %v1090_v37 = vld [vmem:[%s2529_s16] sm:$0xff]  ;;  %s1329_s16 = sshll.u32 %s1449_s9, 4  ;;  %s1330_s16 = int_to_ptr.vmem [resolvable:$true] %s1329_s16 }
 0x3d5   :  { %1165 = vmatpush.msrb.mxu3 %v1091_v36  ;;  %1119 = vmatpush.msra.mxu1 %v1091_v36 }
 0x3d6   :  { %v1030_v39 = vsel %vm990_vm7, %v988_v38, 0.0 }
 0x3d7   :  { %1031 = vadd.xlane.f32.xlu0 %v1030_v39  ;;  %1166 = vmatpush.msrb.mxu3 %v1090_v37 }
 0x3d8   :  { %1120 = vmatpush.msra.mxu1 %v1090_v37 }
 0x3df   :  { %992 = vadd.xlane.f32.xlu0 %v991_v40 }
 0x44a   :  { %v1032_v48 = vpop.xlane.xlu0 %1031 }
 0x44b   :  { %v1033_v49 = vmul.f32 %v1032_v48, %v1000_v47  ;;  %v1194_v48 = vld [vmem:[%s2531_s18 + $0x38] sm:$0xff] }
 0x44c   :  { %1247 = vmatpush.msrb.mxu1 %v1194_v48 }
 0x44d   :  { %v2342_v50 = vsub.f32 %v988_v38, %v1033_v49  ;;  %v1404_v38 = vld [vmem:[%s2528_s15] ss:$0 sm:$0xff]  ;;  %v1197_v49 = vld [vmem:[%s2532_s19 + $0x10] sm:$0xff]  ;;  %s1331_s15 = sshll.u32 %s2536_s23, 4  ;;  %s1332_s15 = int_to_ptr.hbm [resolvable:$true] %s1331_s15 }
 0x44f   :  { %v1035_v51 = vmul.f32 %v2342_v50, %v2342_v50 }
 0x451   :  { %v1036_v52 = vsel %vm990_vm7, %v1035_v51, 0.0  ;;  %v1196_v51 = vld [vmem:[%s2532_s19 + $0x8] sm:$0xff] }
 0x452   :  { %1037 = vadd.xlane.f32.xlu0 %v1036_v52  ;;  %v993_v53 = vpop.xlane.xlu0 %992  ;;  %v1192_v52 = vld [vmem:[%s2531_s18 + $0x28] sm:$0xff] }
 0x453   :  { %v1001_v54 = vmul.f32 %v1000_v47, %v993_v53  ;;  %v1195_v53 = vld [vmem:[%s2532_s19] sm:$0xff] }
 0x455   :  { %v2348_v55 = vsub.f32 %v2107_v57, %v1001_v54  ;;  %v1059_v57 = vld [vmem:[%s2527_s14 + $0x28] sm:$0xff]  ;;  %v1191_v54 = vld [vmem:[%s2531_s18 + $0x20] sm:$0xff] }
 0x456   :  { %1138 = vmatpush.msra.mxu2 %v1059_v57  ;;  %1080 = vmatpush.msrb.mxu0 %v1059_v57 }
 0x457   :  { %v1003_v56 = vmul.f32 %v2348_v55, %v2348_v55 }
 0x458   :  { %1139 = vmatpush.msra.mxu2 %v1058_v61  ;;  %1081 = vmatpush.msrb.mxu0 %v1058_v61 }
 0x459   :  { %v1004_v58 = vsel %vm990_vm7, %v1003_v56, 0.0  ;;  %v1189_v56 = vld [vmem:[%s2531_s18 + $0x10] sm:$0xff] }
 0x45a   :  { %1005 = vadd.xlane.f32.xlu2 %v1004_v58  ;;  %1140 = vmatpush.msra.mxu2 %v1057_v62  ;;  %v1188_v58 = vld [vmem:[%s2531_s18 + $0x8] sm:$0xff] }
 0x45b   :  { %1082 = vmatpush.msrb.mxu0 %v1057_v62 }
 0x45c   :  { %1141 = vmatpush.msra.mxu2 %v1056_v63 }
 0x45d   :  { %1083 = vmatpush.msrb.mxu0 %v1056_v63 }
 0x45e   :  { %1142 = vmatpush.msra.mxu2 %v1055_v0 }
 0x45f   :  { %1084 = vmatpush.msrb.mxu0 %v1055_v0 }
 0x460   :  { %1143 = vmatpush.msra.mxu2 %v1054_v1 }
 0x461   :  { %1085 = vmatpush.msrb.mxu0 %v1054_v1 }
 0x463   :  { %1219 = vmatpush.msra.mxu0 %v1202_v43 }
 0x465   :  { %1220 = vmatpush.msra.mxu0 %v1201_v44 }
 0x467   :  { %1221 = vmatpush.msra.mxu0 %v1200_v45 }
 0x469   :  { %1222 = vmatpush.msra.mxu0 %v1199_v46 }
 0x4c5   :  { %v1038_v2 = vpop.xlane.xlu0 %1037 }
 0x4c6   :  { %v1039_v3 = vmul.f32 %v1038_v2, %v1000_v47 }
 0x4c8   :  { %v1040_v4 = vadd.f32 1e-05, %v1039_v3 }
 0x4ca   :  { %1412 = vrsqrt.f32 %v1040_v4  ;;  %vm1047_vm10 = vweird.f32 %v1040_v4 }
 0x4cd   :  { %v1006_v8 = vpop.xlane.xlu2 %1005 }
 0x4ce   :  { %v1007_v9 = vmul.f32 %v1006_v8, %v1000_v47  ;;  %v1198_v47 = vld [vmem:[%s2532_s19 + $0x18] sm:$0xff]  ;;  %s1450_s19 = smov 32  }
 0x4cf   :  { %1223 = vmatpush.msra.mxu0 %v1198_v47 }
 0x4d0   :  { %v1413_v10 = vpop.eup %1412  ;;  %v1008_v11 = vadd.f32 1e-05, %v1007_v9 }
 0x4d1   :  { %v1042_v13 = vmul.f32 %v1413_v10, %v1040_v4  ;;  %vm1048_vm9 = vweird.f32 %v1413_v10  ;;  %1224 = vmatpush.msra.mxu0 %v1197_v49 }
 0x4d2   :  { %1414 = vrsqrt.f32 %v1008_v11  ;;  %vm1049_vm11 = vmor %vm1047_vm10, %vm1048_vm9  ;;  %vm1015_vm14 = vweird.f32 %v1008_v11 }
 0x4d3   :  { %v1043_v15 = vmul.f32 %v1413_v10, %v1042_v13  ;;  %1225 = vmatpush.msra.mxu0 %v1196_v51  ;;  %v1289_v13 = vld [vmem:[%s2534_s21 + $0x28] sm:$0xff] }
 0x4d5   :  { %v1044_v16 = vmul.f32 0.5, %v1043_v15  ;;  %1226 = vmatpush.msra.mxu0 %v1195_v53  ;;  %v1287_v15 = vld [vmem:[%s2534_s21 + $0x18] sm:$0xff] }
 0x4d7   :  { %v1045_v17 = vsub.f32 1.5, %v1044_v16  ;;  %v1286_v16 = vld [vmem:[%s2534_s21 + $0x10] sm:$0xff] }
 0x4d8   :  { %v1415_v18 = vpop.eup %1414 }
 0x4d9   :  { %v1046_v19 = vmul.f32 %v1413_v10, %v1045_v17  ;;  %v1010_v20 = vmul.f32 %v1415_v18, %v1008_v11  ;;  %vm1016_vm12 = vweird.f32 %v1415_v18  ;;  %v1291_v11 = vld [vmem:[%s2534_s21 + $0x38] sm:$0xff]  ;;  %v1406_v17 = vld [vmem:[%s2533_s20] ss:$0 sm:$0xff] }
 0x4da   :  { %vm1017_vm15 = vmor %vm1015_vm14, %vm1016_vm12  ;;  %1307 = vmatpush.msrb.mxu2 %v1291_v11 }
 0x4db   :  { %v1050_v22 = vsel %vm1049_vm11, %v1413_v10, %v1046_v19  ;;  %v1011_v23 = vmul.f32 %v1415_v18, %v1010_v20 }
 0x4dc   :  { %v1051_v24 = vmul.f32 %v1050_v22, %v2342_v50  ;;  %v1193_v50 = vld [vmem:[%s2531_s18 + $0x30] sm:$0xff]  ;;  %1308 = vmatpush.msrb.mxu2 %v1290_v12  ;;  %v1284_v22 = vld [vmem:[%s2534_s21] sm:$0xff] }
 0x4dd   :  { %v1012_v26 = vmul.f32 0.5, %v1011_v23  ;;  %1248 = vmatpush.msrb.mxu1 %v1193_v50 }
 0x4de   :  { %v1052_v27 = vmul.f32 %v1402_v21, %v1051_v24  ;;  %1309 = vmatpush.msrb.mxu2 %v1289_v13 }
 0x4df   :  { %v1013_v28 = vsub.f32 1.5, %v1012_v26  ;;  %1249 = vmatpush.msrb.mxu1 %v1192_v52 }
 0x4e0   :  { %v2402_v30 = vadd.f32 %v1403_v25, %v1052_v27  ;;  %1310 = vmatpush.msrb.mxu2 %v1288_v14 }
 0x4e1   :  { %v1014_v31 = vmul.f32 %v1415_v18, %v1013_v28  ;;  %1250 = vmatpush.msrb.mxu1 %v1191_v54 }
 0x4e2   :  { %1385 = vmatmul.msk.f32.vlgmr.msra.gmra.mxu2 %vm1066_vm13, %v2402_v30 }
 0x4e3   :  { %v1018_v32 = vsel %vm1017_vm15, %v1415_v18, %v1014_v31  ;;  %1311 = vmatpush.msrb.mxu2 %v1287_v15  ;;  %v1285_v18 = vld [vmem:[%s2534_s21 + $0x8] sm:$0xff] }
 0x4e4   :  { %v1019_v33 = vmul.f32 %v1018_v32, %v2348_v55  ;;  %v1190_v55 = vld [vmem:[%s2531_s18 + $0x18] sm:$0xff] }
 0x4e5   :  { %1251 = vmatpush.msrb.mxu1 %v1190_v55  ;;  %1312 = vmatpush.msrb.mxu2 %v1286_v16 }
 0x4e6   :  { %v1024_v34 = vmul.f32 %v1402_v21, %v1019_v33 }
 0x4e7   :  { %1252 = vmatpush.msrb.mxu1 %v1189_v56  ;;  %1313 = vmatpush.msrb.mxu2 %v1285_v18 }
 0x4e8   :  { %v2407_v35 = vadd.f32 %v1403_v25, %v1024_v34 }
 0x4e9   :  { %1253 = vmatpush.msrb.mxu1 %v1188_v58  ;;  %1314 = vmatpush.msrb.mxu2 %v1284_v22 }
 0x4ea   :  { %1383 = vmatmul.msk.f32.vlgmr.msrb.gmra.mxu0 %vm1066_vm13, %v2407_v35 }
 0x4eb   :  { %1254 = vmatpush.msrb.mxu1 %v1187_v59 }
 0x565   :  { %v1145_v39 = vpop.f32.mrf.mxu2 }
 0x566   :  { %v1146_v40 = vadd.f32 %v1404_v38, %v1145_v39  ;;  %v1407_v39 = vld [vmem:[%s2535_s22] ss:$0 sm:$0xff] }
 0x567   :  { %v1087_v41 = vpop.f32.mrf.mxu0 }
 0x568   :  { %v1088_v42 = vadd.f32 %v1404_v38, %v1087_v41  ;;  %1386 = vmatmul.msk.f32.vlgmr.msrb.gmra.mxu3 %vm1066_vm13, %v1146_v40 }
 0x56a   :  { %1384 = vmatmul.msk.f32.vlgmr.msra.gmra.mxu1 %vm1066_vm13, %v1088_v42 }
 0x5e7   :  { %v1122_v61 = vpop.f32.mrf.mxu1 }
 0x5e8   :  { %v1123_v1 = vadd.f32 %v1405_v60, %v1122_v61 }
 0x5ea   :  { %v1172_v5 = vrot.slane %v1123_v1, 1  ;;  %v1173_v6 = vperm.slane %v1123_v1, 0 }
 0x5eb   :  { %v1168_v57 = vpop.f32.mrf.mxu3 }
 0x5ec   :  { %v1169_v62 = vadd.f32 %v1405_v60, %v1168_v57  ;;  %v1174_v7 = vperm.slane %v1172_v5, 0  ;;  %v1177_v8 = vadd.f32 %v1173_v6, %v2407_v35 }
 0x5ee   :  { %v1180_v63 = vrot.slane %v1169_v62, 1  ;;  %v1181_v0 = vperm.slane %v1169_v62, 0  ;;  %v1178_v9 = vadd.f32 %v1174_v7, %v2407_v35 }
 0x5f0   :  { %v1182_v2 = vperm.slane %v1180_v63, 0  ;;  %v1185_v3 = vadd.f32 %v1181_v0, %v2402_v30 }
 0x5f2   :  { %v1186_v4 = vadd.f32 %v1182_v2, %v2402_v30  ;;  %1205 = vst [vmem:[#allocation1] ss:$4 sm:$0xff] %v1185_v3 }
 0x5f4   :  { %1207 = vst [vmem:[#allocation1 + $0x1] ss:$4 sm:$0xff] %v1186_v4 }
 0x5fb   :  { %v1208_v29 = vld.sshfl [vmem:[#allocation1] sm:$0xff pattern:$0x73625140] }
 0x5fc   :  { %1387 = vmatmul.msk.f32.vlgmr.msra.gmra.mxu0 %vm1066_vm13, %v1208_v29  ;;  %1233 = vst [vmem:[#allocation1] ss:$4 sm:$0xff] %v1177_v8 }
 0x5fd   :  { %1235 = vst [vmem:[#allocation1 + $0x1] ss:$4 sm:$0xff] %v1178_v9 }
 0x604   :  { %v1236_v10 = vld.sshfl [vmem:[#allocation1] sm:$0xff pattern:$0x73625140] }
 0x605   :  { %1388 = vmatmul.msk.f32.vlgmr.msrb.gmra.mxu1 %vm1066_vm13, %v1236_v10 }
 0x679   :  { %v1228_v19 = vpop.f32.mrf.mxu0 }
 0x682   :  { %v1256_v20 = vpop.f32.mrf.mxu1 }
 0x683   :  { %v1257_v21 = vadd.f32 %v1256_v20, %v1228_v19 }
 0x685   :  { %v1263_v23 = vadd.f32 %v1406_v17, %v1257_v21 }
 0x687   :  { %v1389_v24 = vmul.f32 -1.442695, %v1263_v23 }
 0x689   :  { %1416 = vpow2.f32 %v1389_v24 }
 0x68f   :  { %v1417_v25 = vpop.eup %1416 }
 0x690   :  { %v1267_v26 = vadd.f32 1.0, %v1417_v25 }
 0x692   :  { %1418 = vrcp.f32 %v1267_v26  ;;  %v1279_v31 = vand.u32 2147483648, %v1267_v26  ;;  %v1277_v33 = vand.u32 2147483647, %v1267_v26  ;;  %vm1273_vm1 = vweird.f32 %v1267_v26 }
 0x694   :  { %v1280_v35 = vor.u32 1.1754944e-38, %v1279_v31  ;;  %vm1278_vm3 = vcmp.eq.f32.partialorder %v1277_v33, 8.507059e+37 }
 0x698   :  { %v1419_v27 = vpop.eup %1418 }
 0x699   :  { %v1269_v28 = vmul.f32 %v1419_v27, %v1267_v26  ;;  %vm1274_vm0 = vweird.f32 %v1419_v27 }
 0x69a   :  { %vm1275_vm2 = vmor %vm1273_vm1, %vm1274_vm0 }
 0x69b   :  { %v1270_v30 = vsub.f32 1.0, %v1269_v28 }
 0x69d   :  { %v1271_v32 = vmul.f32 %v1419_v27, %v1270_v30 }
 0x69f   :  { %v1272_v34 = vadd.f32 %v1419_v27, %v1271_v32 }
 0x6a1   :  { %v1276_v36 = vsel %vm1275_vm2, %v1419_v27, %v1272_v34 }
 0x6a2   :  { %v1281_v37 = vsel %vm1278_vm3, %v1280_v35, %v1276_v36 }
 0x6a3   :  { %v1283_v38 = vmul.f32 %v1281_v37, %v1263_v23 }
 0x6a5   :  { %1390 = vmatmul.msk.f32.vlgmr.msrb.gmra.mxu2 %vm1066_vm13, %v1283_v38 }
 0x728   :  { %v1316_v40 = vpop.f32.mrf.mxu2 }
 0x729   :  { %v1317_v41 = vadd.f32 %v1407_v39, %v1316_v40 }
 0x72b   :  { %v1320_v42 = vrot.slane %v1317_v41, 2  ;;  %1323 = vst.msk [vmem:[#allocation2] sm:$0x3] %vm1322_vm4, %v1317_v41 }
 0x72d   :  { %1324 = vst.msk [vmem:[#allocation2 + $0x2] sm:$0x3] %vm1322_vm4, %v1320_v42 }
 0x72e   :  { %1337 = dma.vmem_to_hbm [thread:$0]  %s1330_s16, 64, %s1332_s15, [#allocation3], %s1450_s19, %s1450_s19, %s1451_s25  }
 0x72f   :  { %1444 = dma.done.wait [#allocation3], 64  }
 0x730   :  { %1445 = vsyncadd [#allocation3], 4294967232 }
 0x731   :  { %1342 = vsyncpa [#allocation3], 1 }

</bundles_post_ra>
